<compile_context>
chip_gen: v7x
topology: tpu7x:2x2x1
jax: 0.10.0
libtpu: 0.0.40
codegen_flags: <defaults>
</compile_context>

<pallas_src>
import jax
import jax.numpy as jnp
from jax.experimental import pallas as pl
from jax.experimental.pallas import tpu as pltpu


def lstm_fc_kernel(xproj_ref, whh_ref, fcw_ref, fcb_ref, out_ref):
    # xproj_ref: (S, B, 4*Hp)  precomputed input projection + bias, gate-padded
    # whh_ref:   (Hp, 4*Hp)    W_hh^T, rows/cols gate-padded with zeros
    # fcw_ref:   (1, Hp)       fc weight row, zero-padded
    # fcb_ref:   (1, 1)        fc bias
    # out_ref:   (B, 1)
    S, B, G4 = xproj_ref.shape
    Hp = G4 // 4

    whh = whh_ref[...]  # load recurrent weights once; resident for the whole loop

    def step(t, carry):
        h, c = carry
        gates = xproj_ref[t] + jnp.dot(h, whh, preferred_element_type=jnp.float32)
        # Each slice below is a whole 128-lane vreg (Hp == 128): no masked ops.
        i_g = jax.nn.sigmoid(gates[:, 0 * Hp:1 * Hp])
        f_g = jax.nn.sigmoid(gates[:, 1 * Hp:2 * Hp])
        g_g = jnp.tanh(gates[:, 2 * Hp:3 * Hp])
        o_g = jax.nn.sigmoid(gates[:, 3 * Hp:4 * Hp])
        c_new = f_g * c + i_g * g_g
        h_new = o_g * jnp.tanh(c_new)
        return h_new, c_new

    h0 = jnp.zeros((B, Hp), jnp.float32)
    c0 = jnp.zeros((B, Hp), jnp.float32)
    h_last, _ = jax.lax.fori_loop(0, S, step, (h0, c0), unroll=True)

    # Final linear layer on the VPU/XLU (avoid an N=1 MXU matmul on the tail).
    out_ref[...] = (jnp.sum(h_last * fcw_ref[...], axis=-1, keepdims=True)
                    + fcb_ref[...]).astype(out_ref.dtype)


def lstm_model_forward(x, params):
    """x: (batch, seq, input_size) float32.  Returns (batch, 1)."""
    w_ih, w_hh, b_ih, b_hh, fc_w, fc_b = params
    B, S, I = x.shape
    H = w_hh.shape[1]
    Hp = ((H + 127) // 128) * 128          # lane-pad each gate to full vregs

    x_tm = jnp.transpose(x, (1, 0, 2))     # (S, B, I) time-major

    # Input projection for ALL time steps at once (off the serial critical path).
    # With I=1 this is effectively a broadcast multiply; XLA handles it outside
    # the kernel.  Bias (b_ih + b_hh) is folded in here.
    xproj = jnp.einsum('sbi,gi->sbg', x_tm, w_ih) + (b_ih + b_hh)   # (S, B, 4H)

    # Gate-pad the 4H axis so each gate occupies a full Hp=128-lane block.
    xproj_p = jnp.pad(xproj.reshape(S, B, 4, H),
                      ((0, 0), (0, 0), (0, 0), (0, Hp - H))).reshape(S, B, 4 * Hp)

    # W_hh^T: (H, 4H) -> gate-pad columns and zero-pad rows to (Hp, 4*Hp).
    whh_p = jnp.pad(jnp.transpose(w_hh).reshape(H, 4, H),
                    ((0, Hp - H), (0, 0), (0, Hp - H))).reshape(Hp, 4 * Hp)

    fcw_p = jnp.pad(fc_w, ((0, 0), (0, Hp - H)))   # (1, Hp)
    fcb = fc_b.reshape(1, 1)                       # (1, 1)

    # Single kernel invocation; everything (a few hundred KiB) lives in VMEM.
    return pl.pallas_call(
        lstm_fc_kernel,
        out_shape=jax.ShapeDtypeStruct((B, 1), jnp.float32),
        in_specs=[pl.BlockSpec(memory_space=pltpu.MemorySpace.VMEM)] * 4,
        out_specs=pl.BlockSpec(memory_space=pltpu.MemorySpace.VMEM),
    )(xproj_p, whh_p, fcw_p, fcb)


def reference_forward(x, params):
    """Pure-JAX reference matching PyTorch nn.LSTM + Linear semantics."""
    w_ih, w_hh, b_ih, b_hh, fc_w, fc_b = params
    B, S, I = x.shape
    H = w_hh.shape[1]

    def step(carry, x_t):
        h, c = carry
        gates = x_t @ w_ih.T + b_ih + h @ w_hh.T + b_hh
        i_g = jax.nn.sigmoid(gates[:, 0 * H:1 * H])
        f_g = jax.nn.sigmoid(gates[:, 1 * H:2 * H])
        g_g = jnp.tanh(gates[:, 2 * H:3 * H])
        o_g = jax.nn.sigmoid(gates[:, 3 * H:4 * H])
        c = f_g * c + i_g * g_g
        h = o_g * jnp.tanh(c)
        return (h, c), None

    h0 = jnp.zeros((B, H), jnp.float32)
    c0 = jnp.zeros((B, H), jnp.float32)
    (h_last, _), _ = jax.lax.scan(step, (h0, c0), jnp.transpose(x, (1, 0, 2)))
    return h_last @ fc_w.T + fc_b


def init_params(key, input_size=1, hidden_size=64):
    # PyTorch default init: U(-1/sqrt(H), 1/sqrt(H)) for all LSTM/Linear params.
    k = 1.0 / jnp.sqrt(jnp.float32(hidden_size))
    keys = jax.random.split(key, 6)
    w_ih = jax.random.uniform(keys[0], (4 * hidden_size, input_size),
                              jnp.float32, -k, k)
    w_hh = jax.random.uniform(keys[1], (4 * hidden_size, hidden_size),
                              jnp.float32, -k, k)
    b_ih = jax.random.uniform(keys[2], (4 * hidden_size,), jnp.float32, -k, k)
    b_hh = jax.random.uniform(keys[3], (4 * hidden_size,), jnp.float32, -k, k)
    fc_w = jax.random.uniform(keys[4], (1, hidden_size), jnp.float32, -k, k)
    fc_b = jax.random.uniform(keys[5], (1,), jnp.float32, -k, k)
    return (w_ih, w_hh, b_ih, b_hh, fc_w, fc_b)


if __name__ == "__main__":
    batch, seq, input_size, hidden = 4, 8, 1, 64

    key = jax.random.PRNGKey(0)
    x_key, p_key = jax.random.split(key)
    x = jax.random.normal(x_key, (batch, seq, input_size), jnp.float32)
    params = init_params(p_key, input_size, hidden)

    out = jax.block_until_ready(lstm_model_forward(x, params))
    ref = jax.block_until_ready(reference_forward(x, params))

    assert out.shape == (batch, 1)
    assert jnp.allclose(out, ref, atol=1e-4, rtol=1e-4), (out, ref)

    print("KERNEL_OK")
</pallas_src>

<mosaic_0001>
module attributes {stable_mosaic.version = 11 : i64} {
  func.func @lstm_fc_kernel(%arg0: memref<8x4x512xf32, #tpu.memory_space<vmem>>, %arg1: memref<128x512xf32, #tpu.memory_space<vmem>>, %arg2: memref<1x128xf32, #tpu.memory_space<vmem>>, %arg3: memref<1x1xf32, #tpu.memory_space<vmem>>, %arg4: memref<4x1xf32, #tpu.memory_space<vmem>>) attributes {dimension_semantics = [], scalar_prefetch = 0 : i64, scratch_operands = 0 : i64, tpu.core_type = #tpu.core_type<tc>} {
    %c0 = arith.constant 0 : index
    %c0_0 = arith.constant 0 : index
    %0 = vector.load %arg1[%c0, %c0_0] : memref<128x512xf32, #tpu.memory_space<vmem>>, vector<128x512xf32>
    %cst = arith.constant 0.000000e+00 : f32
    %1 = vector.broadcast %cst : f32 to vector<4x128xf32>
    %cst_1 = arith.constant 0.000000e+00 : f32
    %2 = vector.broadcast %cst_1 : f32 to vector<4x128xf32>
    %c0_i32 = arith.constant 0 : i32
    %3 = arith.index_cast %c0_i32 : i32 to index
    %c0_2 = arith.constant 0 : index
    %c0_3 = arith.constant 0 : index
    %4 = vector.load %arg0[%3, %c0_2, %c0_3] : memref<8x4x512xf32, #tpu.memory_space<vmem>>, vector<1x4x512xf32>
    %5 = vector.shape_cast %4 : vector<1x4x512xf32> to vector<4x512xf32>
    %cst_4 = arith.constant dense<0.000000e+00> : vector<4x512xf32>
    %6 = tpu.matmul %1, %0, %cst_4 {dimension_numbers = #tpu.dot_dimension_numbers<[1], [0], [0], [1], [0, 0, 1, 1], [], []>} : vector<4x128xf32>, vector<128x512xf32>, vector<4x512xf32> -> vector<4x512xf32>
    %7 = arith.addf %5, %6 : vector<4x512xf32>
    %8 = vector.extract_strided_slice %7 {offsets = [0, 0], sizes = [4, 128], strides = [1, 1]} : vector<4x512xf32> to vector<4x128xf32>
    %9 = arith.negf %8 : vector<4x128xf32>
    %10 = math.exp %9 : vector<4x128xf32>
    %cst_5 = arith.constant 1.000000e+00 : f32
    %11 = vector.broadcast %cst_5 : f32 to vector<4x128xf32>
    %12 = arith.addf %11, %10 : vector<4x128xf32>
    %13 = arith.divf %11, %12 : vector<4x128xf32>
    %14 = vector.extract_strided_slice %7 {offsets = [0, 128], sizes = [4, 128], strides = [1, 1]} : vector<4x512xf32> to vector<4x128xf32>
    %15 = arith.negf %14 : vector<4x128xf32>
    %16 = math.exp %15 : vector<4x128xf32>
    %cst_6 = arith.constant 1.000000e+00 : f32
    %17 = vector.broadcast %cst_6 : f32 to vector<4x128xf32>
    %18 = arith.addf %17, %16 : vector<4x128xf32>
    %19 = arith.divf %17, %18 : vector<4x128xf32>
    %20 = vector.extract_strided_slice %7 {offsets = [0, 256], sizes = [4, 128], strides = [1, 1]} : vector<4x512xf32> to vector<4x128xf32>
    %21 = math.tanh %20 : vector<4x128xf32>
    %22 = vector.extract_strided_slice %7 {offsets = [0, 384], sizes = [4, 128], strides = [1, 1]} : vector<4x512xf32> to vector<4x128xf32>
    %23 = arith.negf %22 : vector<4x128xf32>
    %24 = math.exp %23 : vector<4x128xf32>
    %cst_7 = arith.constant 1.000000e+00 : f32
    %25 = vector.broadcast %cst_7 : f32 to vector<4x128xf32>
    %26 = arith.addf %25, %24 : vector<4x128xf32>
    %27 = arith.divf %25, %26 : vector<4x128xf32>
    %28 = arith.mulf %19, %2 : vector<4x128xf32>
    %29 = arith.mulf %13, %21 : vector<4x128xf32>
    %30 = arith.addf %28, %29 : vector<4x128xf32>
    %31 = math.tanh %30 : vector<4x128xf32>
    %32 = arith.mulf %27, %31 : vector<4x128xf32>
    %c1_i32 = arith.constant 1 : i32
    %33 = arith.index_cast %c1_i32 : i32 to index
    %c0_8 = arith.constant 0 : index
    %c0_9 = arith.constant 0 : index
    %34 = vector.load %arg0[%33, %c0_8, %c0_9] : memref<8x4x512xf32, #tpu.memory_space<vmem>>, vector<1x4x512xf32>
    %35 = vector.shape_cast %34 : vector<1x4x512xf32> to vector<4x512xf32>
    %cst_10 = arith.constant dense<0.000000e+00> : vector<4x512xf32>
    %36 = tpu.matmul %32, %0, %cst_10 {dimension_numbers = #tpu.dot_dimension_numbers<[1], [0], [0], [1], [0, 0, 1, 1], [], []>} : vector<4x128xf32>, vector<128x512xf32>, vector<4x512xf32> -> vector<4x512xf32>
    %37 = arith.addf %35, %36 : vector<4x512xf32>
    %38 = vector.extract_strided_slice %37 {offsets = [0, 0], sizes = [4, 128], strides = [1, 1]} : vector<4x512xf32> to vector<4x128xf32>
    %39 = arith.negf %38 : vector<4x128xf32>
    %40 = math.exp %39 : vector<4x128xf32>
    %cst_11 = arith.constant 1.000000e+00 : f32
    %41 = vector.broadcast %cst_11 : f32 to vector<4x128xf32>
    %42 = arith.addf %41, %40 : vector<4x128xf32>
    %43 = arith.divf %41, %42 : vector<4x128xf32>
    %44 = vector.extract_strided_slice %37 {offsets = [0, 128], sizes = [4, 128], strides = [1, 1]} : vector<4x512xf32> to vector<4x128xf32>
    %45 = arith.negf %44 : vector<4x128xf32>
    %46 = math.exp %45 : vector<4x128xf32>
    %cst_12 = arith.constant 1.000000e+00 : f32
    %47 = vector.broadcast %cst_12 : f32 to vector<4x128xf32>
    %48 = arith.addf %47, %46 : vector<4x128xf32>
    %49 = arith.divf %47, %48 : vector<4x128xf32>
    %50 = vector.extract_strided_slice %37 {offsets = [0, 256], sizes = [4, 128], strides = [1, 1]} : vector<4x512xf32> to vector<4x128xf32>
    %51 = math.tanh %50 : vector<4x128xf32>
    %52 = vector.extract_strided_slice %37 {offsets = [0, 384], sizes = [4, 128], strides = [1, 1]} : vector<4x512xf32> to vector<4x128xf32>
    %53 = arith.negf %52 : vector<4x128xf32>
    %54 = math.exp %53 : vector<4x128xf32>
    %cst_13 = arith.constant 1.000000e+00 : f32
    %55 = vector.broadcast %cst_13 : f32 to vector<4x128xf32>
    %56 = arith.addf %55, %54 : vector<4x128xf32>
    %57 = arith.divf %55, %56 : vector<4x128xf32>
    %58 = arith.mulf %49, %30 : vector<4x128xf32>
    %59 = arith.mulf %43, %51 : vector<4x128xf32>
    %60 = arith.addf %58, %59 : vector<4x128xf32>
    %61 = math.tanh %60 : vector<4x128xf32>
    %62 = arith.mulf %57, %61 : vector<4x128xf32>
    %c2_i32 = arith.constant 2 : i32
    %63 = arith.index_cast %c2_i32 : i32 to index
    %c0_14 = arith.constant 0 : index
    %c0_15 = arith.constant 0 : index
    %64 = vector.load %arg0[%63, %c0_14, %c0_15] : memref<8x4x512xf32, #tpu.memory_space<vmem>>, vector<1x4x512xf32>
    %65 = vector.shape_cast %64 : vector<1x4x512xf32> to vector<4x512xf32>
    %cst_16 = arith.constant dense<0.000000e+00> : vector<4x512xf32>
    %66 = tpu.matmul %62, %0, %cst_16 {dimension_numbers = #tpu.dot_dimension_numbers<[1], [0], [0], [1], [0, 0, 1, 1], [], []>} : vector<4x128xf32>, vector<128x512xf32>, vector<4x512xf32> -> vector<4x512xf32>
    %67 = arith.addf %65, %66 : vector<4x512xf32>
    %68 = vector.extract_strided_slice %67 {offsets = [0, 0], sizes = [4, 128], strides = [1, 1]} : vector<4x512xf32> to vector<4x128xf32>
    %69 = arith.negf %68 : vector<4x128xf32>
    %70 = math.exp %69 : vector<4x128xf32>
    %cst_17 = arith.constant 1.000000e+00 : f32
    %71 = vector.broadcast %cst_17 : f32 to vector<4x128xf32>
    %72 = arith.addf %71, %70 : vector<4x128xf32>
    %73 = arith.divf %71, %72 : vector<4x128xf32>
    %74 = vector.extract_strided_slice %67 {offsets = [0, 128], sizes = [4, 128], strides = [1, 1]} : vector<4x512xf32> to vector<4x128xf32>
    %75 = arith.negf %74 : vector<4x128xf32>
    %76 = math.exp %75 : vector<4x128xf32>
    %cst_18 = arith.constant 1.000000e+00 : f32
    %77 = vector.broadcast %cst_18 : f32 to vector<4x128xf32>
    %78 = arith.addf %77, %76 : vector<4x128xf32>
    %79 = arith.divf %77, %78 : vector<4x128xf32>
    %80 = vector.extract_strided_slice %67 {offsets = [0, 256], sizes = [4, 128], strides = [1, 1]} : vector<4x512xf32> to vector<4x128xf32>
    %81 = math.tanh %80 : vector<4x128xf32>
    %82 = vector.extract_strided_slice %67 {offsets = [0, 384], sizes = [4, 128], strides = [1, 1]} : vector<4x512xf32> to vector<4x128xf32>
    %83 = arith.negf %82 : vector<4x128xf32>
    %84 = math.exp %83 : vector<4x128xf32>
    %cst_19 = arith.constant 1.000000e+00 : f32
    %85 = vector.broadcast %cst_19 : f32 to vector<4x128xf32>
    %86 = arith.addf %85, %84 : vector<4x128xf32>
    %87 = arith.divf %85, %86 : vector<4x128xf32>
    %88 = arith.mulf %79, %60 : vector<4x128xf32>
    %89 = arith.mulf %73, %81 : vector<4x128xf32>
    %90 = arith.addf %88, %89 : vector<4x128xf32>
    %91 = math.tanh %90 : vector<4x128xf32>
    %92 = arith.mulf %87, %91 : vector<4x128xf32>
    %c3_i32 = arith.constant 3 : i32
    %93 = arith.index_cast %c3_i32 : i32 to index
    %c0_20 = arith.constant 0 : index
    %c0_21 = arith.constant 0 : index
    %94 = vector.load %arg0[%93, %c0_20, %c0_21] : memref<8x4x512xf32, #tpu.memory_space<vmem>>, vector<1x4x512xf32>
    %95 = vector.shape_cast %94 : vector<1x4x512xf32> to vector<4x512xf32>
    %cst_22 = arith.constant dense<0.000000e+00> : vector<4x512xf32>
    %96 = tpu.matmul %92, %0, %cst_22 {dimension_numbers = #tpu.dot_dimension_numbers<[1], [0], [0], [1], [0, 0, 1, 1], [], []>} : vector<4x128xf32>, vector<128x512xf32>, vector<4x512xf32> -> vector<4x512xf32>
    %97 = arith.addf %95, %96 : vector<4x512xf32>
    %98 = vector.extract_strided_slice %97 {offsets = [0, 0], sizes = [4, 128], strides = [1, 1]} : vector<4x512xf32> to vector<4x128xf32>
    %99 = arith.negf %98 : vector<4x128xf32>
    %100 = math.exp %99 : vector<4x128xf32>
    %cst_23 = arith.constant 1.000000e+00 : f32
    %101 = vector.broadcast %cst_23 : f32 to vector<4x128xf32>
    %102 = arith.addf %101, %100 : vector<4x128xf32>
    %103 = arith.divf %101, %102 : vector<4x128xf32>
    %104 = vector.extract_strided_slice %97 {offsets = [0, 128], sizes = [4, 128], strides = [1, 1]} : vector<4x512xf32> to vector<4x128xf32>
    %105 = arith.negf %104 : vector<4x128xf32>
    %106 = math.exp %105 : vector<4x128xf32>
    %cst_24 = arith.constant 1.000000e+00 : f32
    %107 = vector.broadcast %cst_24 : f32 to vector<4x128xf32>
    %108 = arith.addf %107, %106 : vector<4x128xf32>
    %109 = arith.divf %107, %108 : vector<4x128xf32>
    %110 = vector.extract_strided_slice %97 {offsets = [0, 256], sizes = [4, 128], strides = [1, 1]} : vector<4x512xf32> to vector<4x128xf32>
    %111 = math.tanh %110 : vector<4x128xf32>
    %112 = vector.extract_strided_slice %97 {offsets = [0, 384], sizes = [4, 128], strides = [1, 1]} : vector<4x512xf32> to vector<4x128xf32>
    %113 = arith.negf %112 : vector<4x128xf32>
    %114 = math.exp %113 : vector<4x128xf32>
    %cst_25 = arith.constant 1.000000e+00 : f32
    %115 = vector.broadcast %cst_25 : f32 to vector<4x128xf32>
    %116 = arith.addf %115, %114 : vector<4x128xf32>
    %117 = arith.divf %115, %116 : vector<4x128xf32>
    %118 = arith.mulf %109, %90 : vector<4x128xf32>
    %119 = arith.mulf %103, %111 : vector<4x128xf32>
    %120 = arith.addf %118, %119 : vector<4x128xf32>
    %121 = math.tanh %120 : vector<4x128xf32>
    %122 = arith.mulf %117, %121 : vector<4x128xf32>
    %c4_i32 = arith.constant 4 : i32
    %123 = arith.index_cast %c4_i32 : i32 to index
    %c0_26 = arith.constant 0 : index
    %c0_27 = arith.constant 0 : index
    %124 = vector.load %arg0[%123, %c0_26, %c0_27] : memref<8x4x512xf32, #tpu.memory_space<vmem>>, vector<1x4x512xf32>
    %125 = vector.shape_cast %124 : vector<1x4x512xf32> to vector<4x512xf32>
    %cst_28 = arith.constant dense<0.000000e+00> : vector<4x512xf32>
    %126 = tpu.matmul %122, %0, %cst_28 {dimension_numbers = #tpu.dot_dimension_numbers<[1], [0], [0], [1], [0, 0, 1, 1], [], []>} : vector<4x128xf32>, vector<128x512xf32>, vector<4x512xf32> -> vector<4x512xf32>
    %127 = arith.addf %125, %126 : vector<4x512xf32>
    %128 = vector.extract_strided_slice %127 {offsets = [0, 0], sizes = [4, 128], strides = [1, 1]} : vector<4x512xf32> to vector<4x128xf32>
    %129 = arith.negf %128 : vector<4x128xf32>
    %130 = math.exp %129 : vector<4x128xf32>
    %cst_29 = arith.constant 1.000000e+00 : f32
    %131 = vector.broadcast %cst_29 : f32 to vector<4x128xf32>
    %132 = arith.addf %131, %130 : vector<4x128xf32>
    %133 = arith.divf %131, %132 : vector<4x128xf32>
    %134 = vector.extract_strided_slice %127 {offsets = [0, 128], sizes = [4, 128], strides = [1, 1]} : vector<4x512xf32> to vector<4x128xf32>
    %135 = arith.negf %134 : vector<4x128xf32>
    %136 = math.exp %135 : vector<4x128xf32>
    %cst_30 = arith.constant 1.000000e+00 : f32
    %137 = vector.broadcast %cst_30 : f32 to vector<4x128xf32>
    %138 = arith.addf %137, %136 : vector<4x128xf32>
    %139 = arith.divf %137, %138 : vector<4x128xf32>
    %140 = vector.extract_strided_slice %127 {offsets = [0, 256], sizes = [4, 128], strides = [1, 1]} : vector<4x512xf32> to vector<4x128xf32>
    %141 = math.tanh %140 : vector<4x128xf32>
    %142 = vector.extract_strided_slice %127 {offsets = [0, 384], sizes = [4, 128], strides = [1, 1]} : vector<4x512xf32> to vector<4x128xf32>
    %143 = arith.negf %142 : vector<4x128xf32>
    %144 = math.exp %143 : vector<4x128xf32>
    %cst_31 = arith.constant 1.000000e+00 : f32
    %145 = vector.broadcast %cst_31 : f32 to vector<4x128xf32>
    %146 = arith.addf %145, %144 : vector<4x128xf32>
    %147 = arith.divf %145, %146 : vector<4x128xf32>
    %148 = arith.mulf %139, %120 : vector<4x128xf32>
    %149 = arith.mulf %133, %141 : vector<4x128xf32>
    %150 = arith.addf %148, %149 : vector<4x128xf32>
    %151 = math.tanh %150 : vector<4x128xf32>
    %152 = arith.mulf %147, %151 : vector<4x128xf32>
    %c5_i32 = arith.constant 5 : i32
    %153 = arith.index_cast %c5_i32 : i32 to index
    %c0_32 = arith.constant 0 : index
    %c0_33 = arith.constant 0 : index
    %154 = vector.load %arg0[%153, %c0_32, %c0_33] : memref<8x4x512xf32, #tpu.memory_space<vmem>>, vector<1x4x512xf32>
    %155 = vector.shape_cast %154 : vector<1x4x512xf32> to vector<4x512xf32>
    %cst_34 = arith.constant dense<0.000000e+00> : vector<4x512xf32>
    %156 = tpu.matmul %152, %0, %cst_34 {dimension_numbers = #tpu.dot_dimension_numbers<[1], [0], [0], [1], [0, 0, 1, 1], [], []>} : vector<4x128xf32>, vector<128x512xf32>, vector<4x512xf32> -> vector<4x512xf32>
    %157 = arith.addf %155, %156 : vector<4x512xf32>
    %158 = vector.extract_strided_slice %157 {offsets = [0, 0], sizes = [4, 128], strides = [1, 1]} : vector<4x512xf32> to vector<4x128xf32>
    %159 = arith.negf %158 : vector<4x128xf32>
    %160 = math.exp %159 : vector<4x128xf32>
    %cst_35 = arith.constant 1.000000e+00 : f32
    %161 = vector.broadcast %cst_35 : f32 to vector<4x128xf32>
    %162 = arith.addf %161, %160 : vector<4x128xf32>
    %163 = arith.divf %161, %162 : vector<4x128xf32>
    %164 = vector.extract_strided_slice %157 {offsets = [0, 128], sizes = [4, 128], strides = [1, 1]} : vector<4x512xf32> to vector<4x128xf32>
    %165 = arith.negf %164 : vector<4x128xf32>
    %166 = math.exp %165 : vector<4x128xf32>
    %cst_36 = arith.constant 1.000000e+00 : f32
    %167 = vector.broadcast %cst_36 : f32 to vector<4x128xf32>
    %168 = arith.addf %167, %166 : vector<4x128xf32>
    %169 = arith.divf %167, %168 : vector<4x128xf32>
    %170 = vector.extract_strided_slice %157 {offsets = [0, 256], sizes = [4, 128], strides = [1, 1]} : vector<4x512xf32> to vector<4x128xf32>
    %171 = math.tanh %170 : vector<4x128xf32>
    %172 = vector.extract_strided_slice %157 {offsets = [0, 384], sizes = [4, 128], strides = [1, 1]} : vector<4x512xf32> to vector<4x128xf32>
    %173 = arith.negf %172 : vector<4x128xf32>
    %174 = math.exp %173 : vector<4x128xf32>
    %cst_37 = arith.constant 1.000000e+00 : f32
    %175 = vector.broadcast %cst_37 : f32 to vector<4x128xf32>
    %176 = arith.addf %175, %174 : vector<4x128xf32>
    %177 = arith.divf %175, %176 : vector<4x128xf32>
    %178 = arith.mulf %169, %150 : vector<4x128xf32>
    %179 = arith.mulf %163, %171 : vector<4x128xf32>
    %180 = arith.addf %178, %179 : vector<4x128xf32>
    %181 = math.tanh %180 : vector<4x128xf32>
    %182 = arith.mulf %177, %181 : vector<4x128xf32>
    %c6_i32 = arith.constant 6 : i32
    %183 = arith.index_cast %c6_i32 : i32 to index
    %c0_38 = arith.constant 0 : index
    %c0_39 = arith.constant 0 : index
    %184 = vector.load %arg0[%183, %c0_38, %c0_39] : memref<8x4x512xf32, #tpu.memory_space<vmem>>, vector<1x4x512xf32>
    %185 = vector.shape_cast %184 : vector<1x4x512xf32> to vector<4x512xf32>
    %cst_40 = arith.constant dense<0.000000e+00> : vector<4x512xf32>
    %186 = tpu.matmul %182, %0, %cst_40 {dimension_numbers = #tpu.dot_dimension_numbers<[1], [0], [0], [1], [0, 0, 1, 1], [], []>} : vector<4x128xf32>, vector<128x512xf32>, vector<4x512xf32> -> vector<4x512xf32>
    %187 = arith.addf %185, %186 : vector<4x512xf32>
    %188 = vector.extract_strided_slice %187 {offsets = [0, 0], sizes = [4, 128], strides = [1, 1]} : vector<4x512xf32> to vector<4x128xf32>
    %189 = arith.negf %188 : vector<4x128xf32>
    %190 = math.exp %189 : vector<4x128xf32>
    %cst_41 = arith.constant 1.000000e+00 : f32
    %191 = vector.broadcast %cst_41 : f32 to vector<4x128xf32>
    %192 = arith.addf %191, %190 : vector<4x128xf32>
    %193 = arith.divf %191, %192 : vector<4x128xf32>
    %194 = vector.extract_strided_slice %187 {offsets = [0, 128], sizes = [4, 128], strides = [1, 1]} : vector<4x512xf32> to vector<4x128xf32>
    %195 = arith.negf %194 : vector<4x128xf32>
    %196 = math.exp %195 : vector<4x128xf32>
    %cst_42 = arith.constant 1.000000e+00 : f32
    %197 = vector.broadcast %cst_42 : f32 to vector<4x128xf32>
    %198 = arith.addf %197, %196 : vector<4x128xf32>
    %199 = arith.divf %197, %198 : vector<4x128xf32>
    %200 = vector.extract_strided_slice %187 {offsets = [0, 256], sizes = [4, 128], strides = [1, 1]} : vector<4x512xf32> to vector<4x128xf32>
    %201 = math.tanh %200 : vector<4x128xf32>
    %202 = vector.extract_strided_slice %187 {offsets = [0, 384], sizes = [4, 128], strides = [1, 1]} : vector<4x512xf32> to vector<4x128xf32>
    %203 = arith.negf %202 : vector<4x128xf32>
    %204 = math.exp %203 : vector<4x128xf32>
    %cst_43 = arith.constant 1.000000e+00 : f32
    %205 = vector.broadcast %cst_43 : f32 to vector<4x128xf32>
    %206 = arith.addf %205, %204 : vector<4x128xf32>
    %207 = arith.divf %205, %206 : vector<4x128xf32>
    %208 = arith.mulf %199, %180 : vector<4x128xf32>
    %209 = arith.mulf %193, %201 : vector<4x128xf32>
    %210 = arith.addf %208, %209 : vector<4x128xf32>
    %211 = math.tanh %210 : vector<4x128xf32>
    %212 = arith.mulf %207, %211 : vector<4x128xf32>
    %c7_i32 = arith.constant 7 : i32
    %213 = arith.index_cast %c7_i32 : i32 to index
    %c0_44 = arith.constant 0 : index
    %c0_45 = arith.constant 0 : index
    %214 = vector.load %arg0[%213, %c0_44, %c0_45] : memref<8x4x512xf32, #tpu.memory_space<vmem>>, vector<1x4x512xf32>
    %215 = vector.shape_cast %214 : vector<1x4x512xf32> to vector<4x512xf32>
    %cst_46 = arith.constant dense<0.000000e+00> : vector<4x512xf32>
    %216 = tpu.matmul %212, %0, %cst_46 {dimension_numbers = #tpu.dot_dimension_numbers<[1], [0], [0], [1], [0, 0, 1, 1], [], []>} : vector<4x128xf32>, vector<128x512xf32>, vector<4x512xf32> -> vector<4x512xf32>
    %217 = arith.addf %215, %216 : vector<4x512xf32>
    %218 = vector.extract_strided_slice %217 {offsets = [0, 0], sizes = [4, 128], strides = [1, 1]} : vector<4x512xf32> to vector<4x128xf32>
    %219 = arith.negf %218 : vector<4x128xf32>
    %220 = math.exp %219 : vector<4x128xf32>
    %cst_47 = arith.constant 1.000000e+00 : f32
    %221 = vector.broadcast %cst_47 : f32 to vector<4x128xf32>
    %222 = arith.addf %221, %220 : vector<4x128xf32>
    %223 = arith.divf %221, %222 : vector<4x128xf32>
    %224 = vector.extract_strided_slice %217 {offsets = [0, 128], sizes = [4, 128], strides = [1, 1]} : vector<4x512xf32> to vector<4x128xf32>
    %225 = arith.negf %224 : vector<4x128xf32>
    %226 = math.exp %225 : vector<4x128xf32>
    %cst_48 = arith.constant 1.000000e+00 : f32
    %227 = vector.broadcast %cst_48 : f32 to vector<4x128xf32>
    %228 = arith.addf %227, %226 : vector<4x128xf32>
    %229 = arith.divf %227, %228 : vector<4x128xf32>
    %230 = vector.extract_strided_slice %217 {offsets = [0, 256], sizes = [4, 128], strides = [1, 1]} : vector<4x512xf32> to vector<4x128xf32>
    %231 = math.tanh %230 : vector<4x128xf32>
    %232 = vector.extract_strided_slice %217 {offsets = [0, 384], sizes = [4, 128], strides = [1, 1]} : vector<4x512xf32> to vector<4x128xf32>
    %233 = arith.negf %232 : vector<4x128xf32>
    %234 = math.exp %233 : vector<4x128xf32>
    %cst_49 = arith.constant 1.000000e+00 : f32
    %235 = vector.broadcast %cst_49 : f32 to vector<4x128xf32>
    %236 = arith.addf %235, %234 : vector<4x128xf32>
    %237 = arith.divf %235, %236 : vector<4x128xf32>
    %238 = arith.mulf %229, %210 : vector<4x128xf32>
    %239 = arith.mulf %223, %231 : vector<4x128xf32>
    %240 = arith.addf %238, %239 : vector<4x128xf32>
    %241 = math.tanh %240 : vector<4x128xf32>
    %242 = arith.mulf %237, %241 : vector<4x128xf32>
    %c8_i32 = arith.constant 8 : i32
    %c0_50 = arith.constant 0 : index
    %c0_51 = arith.constant 0 : index
    %243 = vector.load %arg2[%c0_50, %c0_51] : memref<1x128xf32, #tpu.memory_space<vmem>>, vector<1x128xf32>
    %244 = vector.broadcast %243 : vector<1x128xf32> to vector<4x128xf32>
    %245 = arith.mulf %242, %244 : vector<4x128xf32>
    %cst_52 = arith.constant dense<0.000000e+00> : vector<4xf32>
    %246 = vector.multi_reduction <add>, %245, %cst_52 [1] : vector<4x128xf32> to vector<4xf32>
    %247 = vector.shape_cast %246 : vector<4xf32> to vector<4x1xf32>
    %c0_53 = arith.constant 0 : index
    %c0_54 = arith.constant 0 : index
    %248 = vector.load %arg3[%c0_53, %c0_54] : memref<1x1xf32, #tpu.memory_space<vmem>>, vector<1x1xf32>
    %249 = vector.broadcast %248 : vector<1x1xf32> to vector<4x1xf32>
    %250 = arith.addf %247, %249 : vector<4x1xf32>
    %c0_55 = arith.constant 0 : index
    %c0_56 = arith.constant 0 : index
    %251 = vector.load %arg4[%c0_55, %c0_56] : memref<4x1xf32, #tpu.memory_space<vmem>>, vector<4x1xf32>
    tpu.vector_store %arg4[%c0_55, %c0_56], %250 {strides = array<i32>} : memref<4x1xf32, #tpu.memory_space<vmem>>, vector<4x1xf32>,
    return
  }
}

</mosaic_0001>

<bundles_post_ra>
// kernel: tpu_custom_call.1
= control target key start
LH: loop header
LB: loop body
LE: loop exit
PB: predicated region body
PF: predicated region fallthrough
CT: control target
= control target key end

     0   :  { %s2766_s0 = inlined_call_operand.hbm [shape: f32[8,4,512], index: 0, kind: input, shape index: {}]   ;;  %s2767_s1 = inlined_call_operand.hbm [shape: f32[128,512], index: 1, kind: input, shape index: {}]   ;;  %s2768_s2 = inlined_call_operand.vmem [shape: f32[1,128], index: 2, kind: input, shape index: {}]   ;;  %s2769_s3 = inlined_call_operand.<no memory space> [shape: f32[1,1], index: 3, kind: input, shape index: {}]   ;;  %s2770_s4 = inlined_call_operand.vmem [shape: f32[4,1], index: 4, kind: output, shape index: {}]  }
   0x1   :  { %v9_v0 = vstv %s2769_s3 }
   0x2   :  { %10 = vst [vmem:[#allocation2] sm:$0x1] %v9_v0 }
   0x3   :  { %11 = vsyncpa [#allocation4], 0 }
   0x4   :  { %12 = vsyncpa [#allocation6], 0  ;;  %s2339_s17 = smov [#allocation3]   ;;  %s2291_s21 = scalar_lea.hbm %s2766_s0, 2048 }
   0x5   :  { %s18_s18 = sshll.u32 %s2339_s17, 4  ;;  %p2292_p0 = scmp.ne.s32.totalorder %s2766_s0, %s2291_s21  ;;  %s19_s18 = int_to_ptr.vmem [resolvable:$true] %s18_s18 }
   0x6   :  { %p2295_p1 = scmp.lt.u32.totalorder %s2291_s21, %s2766_s0 }
   0x8   :  { %p2297_p2 = pnand %p2295_p1, %p2292_p0 }
   0xa   :  { %2300 = shalt.err (!%p2297_p2)
}
   0xb   :  { %s2301_s3 = scalar_lea.vmem %s19_s18, 2048  ;;  %p2306_p4 = scmp.lt.s32.totalorder %s19_s18, %s19_s18 }
   0xc   :  { %p2302_p3 = scmp.ne.s32.totalorder %s19_s18, %s2301_s3  ;;  %p2307_p5 = scmp.lt.s32.totalorder %s2301_s3, %s2301_s3 }
   0xe   :  { %p2308_p6 = por %p2307_p5, %p2306_p4 }
  0x10   :  { %p2309_p7 = pnand %p2308_p6, %p2302_p3 }
  0x12   :  { %2312 = shalt.err (!%p2309_p7)
}
  0x13   :  { %s2340_s26 = smov 256   ;;  %s2341_s27 = smov 16  }
  0x14   :  { %24 = dma.hbm_to_vmem [thread:$0]  %s2766_s0, 2048, %s19_s18, [#allocation4], %s2340_s26, %s2340_s26, %s2341_s27  }
  0x15   :  { %s2342_s30 = smov [#allocation5]   ;;  %s2313_s8 = scalar_lea.hbm %s2767_s1, 8192 }
  0x16   :  { %s30_s5 = sshll.u32 %s2342_s30, 4  ;;  %p2314_p8 = scmp.ne.s32.totalorder %s2767_s1, %s2313_s8  ;;  %s31_s5 = int_to_ptr.vmem [resolvable:$true] %s30_s5 }
  0x17   :  { %p2317_p9 = scmp.lt.u32.totalorder %s2313_s8, %s2767_s1 }
  0x19   :  { %p2319_p10 = pnand %p2317_p9, %p2314_p8 }
  0x1b   :  { %2322 = shalt.err (!%p2319_p10)
}
  0x1c   :  { %s2323_s13 = scalar_lea.vmem %s31_s5, 8192  ;;  %p2328_p12 = scmp.lt.s32.totalorder %s31_s5, %s31_s5 }
  0x1d   :  { %p2324_p11 = scmp.ne.s32.totalorder %s31_s5, %s2323_s13  ;;  %p2329_p13 = scmp.lt.s32.totalorder %s2323_s13, %s2323_s13 }
  0x1f   :  { %p2330_p0 = por %p2329_p13, %p2328_p12 }
  0x21   :  { %p2331_p1 = pnand %p2330_p0, %p2324_p11 }
  0x23   :  { %2334 = shalt.err (!%p2331_p1)
}
  0x24   :  { %s2343_s0 = smov 512   ;;  %s2344_s14 = smov 32  }
  0x25   :  { %36 = dma.hbm_to_vmem [thread:$0]  %s2767_s1, 8192, %s31_s5, [#allocation6], %s2343_s0, %s2343_s0, %s2344_s14  }
  0x26   :  { %2335 = dma.done.wait [#allocation4], 2048  }
  0x27   :  { %2336 = vsyncadd [#allocation4], 4294965248 }
  0x28   :  { %2337 = dma.done.wait [#allocation6], 8192  }
  0x29   :  { %2338 = vsyncadd [#allocation6], 4294959104  ;;  %v2345_v1 = vmov 0.0   ;;  %v48_v2 = vld [vmem:[#allocation5 + $0x8] sm:$0xff]  ;;  %v47_v4 = vld [vmem:[#allocation5] sm:$0xff]  ;;  %vm1598_vm0 = vcmask 1043456  }
  0x2a   :  { %177 = vmatprep.mubr.f32.mxu0 %v2345_v1  ;;  %248 = vmatprep.mubr.f32.mxu1 %v2345_v1  ;;  %v52_v3 = vld [vmem:[#allocation5 + $0x28] sm:$0xff]  ;;  %v51_v6 = vld [vmem:[#allocation5 + $0x20] sm:$0xff]  ;;  %v50_v20 = vld [vmem:[#allocation5 + $0x18] sm:$0xff]  ;;  %vm1610_vm1 = vcmask 3072  }
  0x2b   :  { %v2400_v5 = vpack.c.bf16 %v52_v3, %v48_v2  ;;  %v56_v7 = vld [vmem:[#allocation5 + $0x48] sm:$0xff]  ;;  %v2402_v9 = vpack.c.bf16 %v51_v6, %v47_v4  ;;  %v55_v11 = vld [vmem:[#allocation5 + $0x40] sm:$0xff]  ;;  %v54_v21 = vld [vmem:[#allocation5 + $0x38] sm:$0xff] }
  0x2c   :  { %v60_v8 = vld [vmem:[#allocation5 + $0x68] sm:$0xff]  ;;  %v59_v12 = vld [vmem:[#allocation5 + $0x60] sm:$0xff]  ;;  %v2413_v23 = vpack.c.bf16 %v54_v21, %v50_v20  ;;  %v49_v24 = vld [vmem:[#allocation5 + $0x10] sm:$0xff] }
  0x2d   :  { %v2404_v10 = vpack.c.bf16 %v60_v8, %v56_v7  ;;  %v64_v13 = vld [vmem:[#allocation5 + $0x88] sm:$0xff]  ;;  %1645 = vmatprep.subr.bf16.mxu0 %v2400_v5  ;;  %v2408_v15 = vpack.c.bf16 %v59_v12, %v55_v11  ;;  %v63_v16 = vld [vmem:[#allocation5 + $0x80] sm:$0xff]  ;;  %v53_v25 = vld [vmem:[#allocation5 + $0x30] sm:$0xff] }
  0x2e   :  { %v68_v14 = vld [vmem:[#allocation5 + $0xa8] sm:$0xff]  ;;  %1647 = vmatpush1.bf16.msra.mxu0 %v2402_v9  ;;  %v67_v17 = vld [vmem:[#allocation5 + $0xa0] sm:$0xff]  ;;  %v2415_v26 = vpack.c.bf16 %v53_v25, %v49_v24  ;;  %1677 = vmatprep.subr.bf16.mxu1 %v2413_v23  ;;  %v58_v28 = vld [vmem:[#allocation5 + $0x58] sm:$0xff] }
  0x2f   :  { %1649 = vmatprep.subr.bf16.mxu0 %v2404_v10  ;;  %v2411_v18 = vpack.c.bf16 %v68_v14, %v64_v13  ;;  %v72_v19 = vld [vmem:[#allocation5 + $0xc8] sm:$0xff]  ;;  %v2418_v27 = vpack.c.bf16 %v67_v17, %v63_v16  ;;  %v62_v29 = vld [vmem:[#allocation5 + $0x78] sm:$0xff]  ;;  %v57_v30 = vld [vmem:[#allocation5 + $0x50] sm:$0xff] }
  0x30   :  { %v76_v22 = vld [vmem:[#allocation5 + $0xe8] sm:$0xff]  ;;  %v71_v32 = vld [vmem:[#allocation5 + $0xc0] sm:$0xff]  ;;  %1679 = vmatpush1.bf16.msra.mxu1 %v2415_v26  ;;  %v2425_v34 = vpack.c.bf16 %v62_v29, %v58_v28  ;;  %v61_v35 = vld [vmem:[#allocation5 + $0x70] sm:$0xff] }
  0x31   :  { %v2422_v31 = vpack.c.bf16 %v76_v22, %v72_v19  ;;  %v75_v33 = vld [vmem:[#allocation5 + $0xe0] sm:$0xff]  ;;  %v80_v36 = vld [vmem:[#allocation5 + $0x108] sm:$0xff]  ;;  %v2427_v38 = vpack.c.bf16 %v61_v35, %v57_v30  ;;  %v66_v39 = vld [vmem:[#allocation5 + $0x98] sm:$0xff] }
  0x32   :  { %1651 = vmatpush1.bf16.msra.mxu0 %v2408_v15  ;;  %v84_v37 = vld [vmem:[#allocation5 + $0x128] sm:$0xff]  ;;  %1681 = vmatprep.subr.bf16.mxu1 %v2425_v34  ;;  %v70_v40 = vld [vmem:[#allocation5 + $0xb8] sm:$0xff]  ;;  %v65_v41 = vld [vmem:[#allocation5 + $0x90] sm:$0xff]  ;;  %v2431_v43 = vpack.c.bf16 %v75_v33, %v71_v32 }
  0x33   :  { %1653 = vmatprep.subr.bf16.mxu0 %v2411_v18  ;;  %v69_v42 = vld [vmem:[#allocation5 + $0xb0] sm:$0xff]  ;;  %v79_v44 = vld [vmem:[#allocation5 + $0x100] sm:$0xff]  ;;  %v2433_v46 = vpack.c.bf16 %v70_v40, %v66_v39  ;;  %v2436_v47 = vpack.c.bf16 %v84_v37, %v80_v36  ;;  %v88_v48 = vld [vmem:[#allocation5 + $0x148] sm:$0xff] }
  0x34   :  { %v83_v45 = vld [vmem:[#allocation5 + $0x120] sm:$0xff]  ;;  %1683 = vmatpush1.bf16.msra.mxu1 %v2427_v38  ;;  %v2439_v49 = vpack.c.bf16 %v69_v42, %v65_v41  ;;  %v74_v50 = vld [vmem:[#allocation5 + $0xd8] sm:$0xff]  ;;  %v92_v52 = vld [vmem:[#allocation5 + $0x168] sm:$0xff] }
  0x35   :  { %v78_v51 = vld [vmem:[#allocation5 + $0xf8] sm:$0xff]  ;;  %1685 = vmatprep.subr.bf16.mxu1 %v2433_v46  ;;  %v73_v54 = vld [vmem:[#allocation5 + $0xd0] sm:$0xff]  ;;  %v2445_v56 = vpack.c.bf16 %v83_v45, %v79_v44  ;;  %v2448_v59 = vpack.c.bf16 %v92_v52, %v88_v48  ;;  %v87_v60 = vld [vmem:[#allocation5 + $0x140] sm:$0xff] }
  0x36   :  { %1655 = vmatpush1.bf16.msra.mxu0 %v2418_v27  ;;  %v2442_v53 = vpack.c.bf16 %v78_v51, %v74_v50  ;;  %v77_v55 = vld [vmem:[#allocation5 + $0xf0] sm:$0xff]  ;;  %v82_v57 = vld [vmem:[#allocation5 + $0x118] sm:$0xff]  ;;  %v91_v61 = vld [vmem:[#allocation5 + $0x160] sm:$0xff] }
  0x37   :  { %1657 = vmatprep.subr.bf16.mxu0 %v2422_v31  ;;  %v86_v58 = vld [vmem:[#allocation5 + $0x138] sm:$0xff]  ;;  %v96_v62 = vld [vmem:[#allocation5 + $0x188] sm:$0xff]  ;;  %v2451_v63 = vpack.c.bf16 %v77_v55, %v73_v54  ;;  %v81_v3 = vld [vmem:[#allocation5 + $0x110] sm:$0xff]  ;;  %v2457_v8 = vpack.c.bf16 %v91_v61, %v87_v60 }
  0x38   :  { %1687 = vmatpush1.bf16.msra.mxu1 %v2439_v49  ;;  %v100_v0 = vld [vmem:[#allocation5 + $0x1a8] sm:$0xff]  ;;  %v2454_v2 = vpack.c.bf16 %v86_v58, %v82_v57  ;;  %v85_v4 = vld [vmem:[#allocation5 + $0x130] sm:$0xff]  ;;  %v90_v6 = vld [vmem:[#allocation5 + $0x158] sm:$0xff] }
  0x39   :  { %1689 = vmatprep.subr.bf16.mxu1 %v2442_v53  ;;  %v94_v7 = vld [vmem:[#allocation5 + $0x178] sm:$0xff]  ;;  %v2460_v11 = vpack.c.bf16 %v100_v0, %v96_v62  ;;  %v95_v12 = vld [vmem:[#allocation5 + $0x180] sm:$0xff]  ;;  %v104_v14 = vld [vmem:[#allocation5 + $0x1c8] sm:$0xff]  ;;  %v2463_v16 = vpack.c.bf16 %v85_v4, %v81_v3 }
  0x3a   :  { %1659 = vmatpush1.bf16.msra.mxu0 %v2431_v43  ;;  %v99_v13 = vld [vmem:[#allocation5 + $0x1a0] sm:$0xff]  ;;  %v108_v17 = vld [vmem:[#allocation5 + $0x1e8] sm:$0xff]  ;;  %v2466_v19 = vpack.c.bf16 %v94_v7, %v90_v6  ;;  %v89_v20 = vld [vmem:[#allocation5 + $0x150] sm:$0xff] }
  0x3b   :  { %1661 = vmatprep.subr.bf16.mxu0 %v2436_v47  ;;  %v93_v21 = vld [vmem:[#allocation5 + $0x170] sm:$0xff]  ;;  %v98_v22 = vld [vmem:[#allocation5 + $0x198] sm:$0xff]  ;;  %v2469_v25 = vpack.c.bf16 %v99_v13, %v95_v12  ;;  %v2472_v28 = vpack.c.bf16 %v108_v17, %v104_v14  ;;  %v103_v29 = vld [vmem:[#allocation5 + $0x1c0] sm:$0xff] }
  0x3c   :  { %1691 = vmatpush1.bf16.msra.mxu1 %v2451_v63  ;;  %v102_v24 = vld [vmem:[#allocation5 + $0x1b8] sm:$0xff]  ;;  %v107_v30 = vld [vmem:[#allocation5 + $0x1e0] sm:$0xff]  ;;  %v2475_v32 = vpack.c.bf16 %v93_v21, %v89_v20  ;;  %v97_v35 = vld [vmem:[#allocation5 + $0x190] sm:$0xff] }
  0x3d   :  { %1693 = vmatprep.subr.bf16.mxu1 %v2454_v2  ;;  %v2478_v33 = vpack.c.bf16 %v102_v24, %v98_v22  ;;  %v101_v36 = vld [vmem:[#allocation5 + $0x1b0] sm:$0xff]  ;;  %v106_v37 = vld [vmem:[#allocation5 + $0x1d8] sm:$0xff]  ;;  %v2481_v40 = vpack.c.bf16 %v107_v30, %v103_v29  ;;  %v111_v51 = vld [vmem:[#allocation3] sm:$0xff] }
  0x3e   :  { %1663 = vmatpush1.bf16.msra.mxu0 %v2445_v56  ;;  %v110_v39 = vld [vmem:[#allocation5 + $0x1f8] sm:$0xff]  ;;  %v2485_v41 = vpack.c.bf16 %v101_v36, %v97_v35  ;;  %v105_v44 = vld [vmem:[#allocation5 + $0x1d0] sm:$0xff]  ;;  %v112_v61 = vld [vmem:[#allocation3 + $0x8] sm:$0xff] }
  0x3f   :  { %1665 = vmatprep.subr.bf16.mxu0 %v2448_v59  ;;  %v2488_v42 = vpack.c.bf16 %v110_v39, %v106_v37  ;;  %v109_v45 = vld [vmem:[#allocation5 + $0x1f0] sm:$0xff] }
  0x40   :  { %1695 = vmatpush1.bf16.msra.mxu1 %v2463_v16  ;;  %v2492_v48 = vpack.c.bf16 %v109_v45, %v105_v44 }
  0x41   :  { %1697 = vmatprep.subr.bf16.mxu1 %v2466_v19 }
  0x42   :  { %1667 = vmatpush1.bf16.msra.mxu0 %v2457_v8 }
  0x43   :  { %1669 = vmatprep.subr.bf16.mxu0 %v2460_v11 }
  0x44   :  { %1699 = vmatpush1.bf16.msra.mxu1 %v2475_v32 }
  0x45   :  { %1701 = vmatprep.subr.bf16.mxu1 %v2478_v33 }
  0x46   :  { %1671 = vmatpush1.bf16.msra.mxu0 %v2469_v25 }
  0x47   :  { %1673 = vmatprep.subr.bf16.mxu0 %v2472_v28 }
  0x48   :  { %1703 = vmatpush1.bf16.msra.mxu1 %v2485_v41 }
  0x49   :  { %1705 = vmatprep.subr.bf16.mxu1 %v2488_v42 }
  0x4a   :  { %1675 = vmatpush1.bf16.msra.mxu0 %v2481_v40 }
  0x4b   :  { %1709 = vmatprep.subr.bf16.mxu0 %v2400_v5 }
  0x4c   :  { %1707 = vmatpush1.bf16.msra.mxu1 %v2492_v48 }
  0x4d   :  { %178 = vmatmul.mubr.f32.vlgmr.msra.gmra.mrb[0].mxu0 %v2345_v1  ;;  %1741 = vmatprep.subr.bf16.mxu1 %v2413_v23 }
  0x4e   :  { %1711 = vmatpush1.bf16.msra.mxu0 %v2402_v9  ;;  %362 = vmatprep.mubr.f32.mxu0 %v2345_v1 }
  0x4f   :  { %1713 = vmatprep.subr.bf16.mxu0 %v2404_v10  ;;  %249 = vmatmul.mubr.f32.vlgmr.msra.gmra.mrb[0].mxu1 %v2345_v1 }
  0x50   :  { %1743 = vmatpush1.bf16.msra.mxu1 %v2415_v26  ;;  %433 = vmatprep.mubr.f32.mxu1 %v2345_v1 }
  0x51   :  { %1745 = vmatprep.subr.bf16.mxu1 %v2425_v34 }
  0x52   :  { %1715 = vmatpush1.bf16.msra.mxu0 %v2408_v15 }
  0x53   :  { %1717 = vmatprep.subr.bf16.mxu0 %v2411_v18 }
  0x54   :  { %1747 = vmatpush1.bf16.msra.mxu1 %v2427_v38 }
  0x55   :  { %1749 = vmatprep.subr.bf16.mxu1 %v2433_v46 }
  0x56   :  { %1719 = vmatpush1.bf16.msra.mxu0 %v2418_v27 }
  0x57   :  { %1721 = vmatprep.subr.bf16.mxu0 %v2422_v31 }
  0x58   :  { %1751 = vmatpush1.bf16.msra.mxu1 %v2439_v49 }
  0x59   :  { %1753 = vmatprep.subr.bf16.mxu1 %v2442_v53 }
  0x5a   :  { %1723 = vmatpush1.bf16.msra.mxu0 %v2431_v43 }
  0x5b   :  { %1725 = vmatprep.subr.bf16.mxu0 %v2436_v47 }
  0x5c   :  { %1755 = vmatpush1.bf16.msra.mxu1 %v2451_v63 }
  0x5d   :  { %1757 = vmatprep.subr.bf16.mxu1 %v2454_v2 }
  0x5e   :  { %1727 = vmatpush1.bf16.msra.mxu0 %v2445_v56 }
  0x5f   :  { %1729 = vmatprep.subr.bf16.mxu0 %v2448_v59 }
  0x60   :  { %1759 = vmatpush1.bf16.msra.mxu1 %v2463_v16 }
  0x61   :  { %1761 = vmatprep.subr.bf16.mxu1 %v2466_v19 }
  0x62   :  { %1731 = vmatpush1.bf16.msra.mxu0 %v2457_v8 }
  0x63   :  { %1733 = vmatprep.subr.bf16.mxu0 %v2460_v11 }
  0x64   :  { %1763 = vmatpush1.bf16.msra.mxu1 %v2475_v32 }
  0x65   :  { %1765 = vmatprep.subr.bf16.mxu1 %v2478_v33 }
  0x66   :  { %1735 = vmatpush1.bf16.msra.mxu0 %v2469_v25 }
  0x67   :  { %1737 = vmatprep.subr.bf16.mxu0 %v2472_v28 }
  0x68   :  { %1767 = vmatpush1.bf16.msra.mxu1 %v2485_v41 }
  0x69   :  { %1769 = vmatprep.subr.bf16.mxu1 %v2488_v42 }
  0x6a   :  { %1739 = vmatpush1.bf16.msra.mxu0 %v2481_v40 }
  0x6b   :  { %1773 = vmatprep.subr.bf16.mxu0 %v2400_v5 }
  0x6c   :  { %1771 = vmatpush1.bf16.msra.mxu1 %v2492_v48 }
  0x6d   :  { %1805 = vmatprep.subr.bf16.mxu1 %v2413_v23 }
 0x120   :  { %v179_v50 = vpop.f32.mrb[0].mxu0 }
 0x121   :  { %v181_v52 = vpop.f32.mrb[1].mxu0 }
 0x122   :  { %v259_v54 = vcombine.low %v179_v50, %v181_v52  ;;  %v250_v57 = vpop.f32.mrb[0].mxu1 }
 0x123   :  { %v252_v62 = vpop.f32.mrb[1].mxu1 }
 0x124   :  { %v263_v55 = vadd.f32 %v259_v54, %v111_v51  ;;  %v260_v0 = vcombine.low %v250_v57, %v252_v62  ;;  %v296_v51 = vld [vmem:[#allocation3 + $0x10] sm:$0xff] }
 0x126   :  { %v1618_v58 = vmul.f32 -1.442695, %v263_v55  ;;  %v272_v60 = vrot.slane %v263_v55, 4  ;;  %v264_v4 = vadd.f32 %v260_v0, %v112_v61 }
 0x128   :  { %2163 = vpow2.f32 %v1618_v58  ;;  %v1619_v3 = vmul.f32 -1.442695, %v272_v60  ;;  %v282_v6 = vrot.slane %v264_v4, 4  ;;  %v297_v60 = vld [vmem:[#allocation3 + $0x18] sm:$0xff] }
 0x12a   :  { %2165 = vpow2.f32 %v1619_v3  ;;  %v1620_v7 = vmul.f32 -1.442695, %v282_v6 }
 0x12b   :  { %2167 = vtanh.f32 %v264_v4 }
 0x12c   :  { %2169 = vpow2.f32 %v1620_v7 }
 0x132   :  { %v2164_v12 = vpop.eup %2163 }
 0x133   :  { %v268_v13 = vadd.f32 1.0, %v2164_v12 }
 0x134   :  { %v2166_v14 = vpop.eup %2165 }
 0x135   :  { %2171 = vrcp.f32 %v268_v13  ;;  %v277_v17 = vadd.f32 1.0, %v2166_v14  ;;  %v2168_v20 = vpop.eup %2167 }
 0x136   :  { %v2170_v21 = vpop.eup %2169 }
 0x137   :  { %2173 = vrcp.f32 %v277_v17  ;;  %v287_v24 = vadd.f32 1.0, %v2170_v21 }
 0x139   :  { %2175 = vrcp.f32 %v287_v24 }
 0x13f   :  { %v2172_v22 = vpop.eup %2171 }
 0x140   :  { %v291_v29 = vmul.f32 %v2172_v22, %v2168_v20 }
 0x141   :  { %v2174_v30 = vpop.eup %2173 }
 0x142   :  { %v290_v35 = vmul.f32 0.0, %v2174_v30 }
 0x143   :  { %v2176_v37 = vpop.eup %2175 }
 0x144   :  { %v2534_v36 = vadd.f32 %v291_v29, %v290_v35 }
 0x146   :  { %2177 = vtanh.f32 %v2534_v36 }
 0x150   :  { %v2178_v39 = vpop.eup %2177 }
 0x151   :  { %v294_v44 = vmul.f32 %v2178_v39, %v2176_v37 }
 0x153   :  { %363 = vmatmul.mubr.f32.vlgmr.msra.gmra.mrb[2].mxu0 %v294_v44  ;;  %434 = vmatmul.mubr.f32.vlgmr.msra.gmra.mrb[2].mxu1 %v294_v44 }
 0x154   :  { %1775 = vmatpush1.bf16.msra.mxu0 %v2402_v9  ;;  %1807 = vmatpush1.bf16.msra.mxu1 %v2415_v26 }
 0x155   :  { %1777 = vmatprep.subr.bf16.mxu0 %v2404_v10  ;;  %1809 = vmatprep.subr.bf16.mxu1 %v2425_v34 }
 0x156   :  { %547 = vmatprep.mubr.f32.mxu0 %v2345_v1  ;;  %618 = vmatprep.mubr.f32.mxu1 %v2345_v1 }
 0x158   :  { %1779 = vmatpush1.bf16.msra.mxu0 %v2408_v15  ;;  %1811 = vmatpush1.bf16.msra.mxu1 %v2427_v38 }
 0x159   :  { %1781 = vmatprep.subr.bf16.mxu0 %v2411_v18  ;;  %1813 = vmatprep.subr.bf16.mxu1 %v2433_v46 }
 0x15c   :  { %1783 = vmatpush1.bf16.msra.mxu0 %v2418_v27  ;;  %1815 = vmatpush1.bf16.msra.mxu1 %v2439_v49 }
 0x15d   :  { %1785 = vmatprep.subr.bf16.mxu0 %v2422_v31  ;;  %1817 = vmatprep.subr.bf16.mxu1 %v2442_v53 }
 0x160   :  { %1787 = vmatpush1.bf16.msra.mxu0 %v2431_v43  ;;  %1819 = vmatpush1.bf16.msra.mxu1 %v2451_v63 }
 0x161   :  { %1789 = vmatprep.subr.bf16.mxu0 %v2436_v47  ;;  %1821 = vmatprep.subr.bf16.mxu1 %v2454_v2 }
 0x164   :  { %1791 = vmatpush1.bf16.msra.mxu0 %v2445_v56  ;;  %1823 = vmatpush1.bf16.msra.mxu1 %v2463_v16 }
 0x165   :  { %1793 = vmatprep.subr.bf16.mxu0 %v2448_v59  ;;  %1825 = vmatprep.subr.bf16.mxu1 %v2466_v19 }
 0x168   :  { %1795 = vmatpush1.bf16.msra.mxu0 %v2457_v8  ;;  %1827 = vmatpush1.bf16.msra.mxu1 %v2475_v32 }
 0x169   :  { %1797 = vmatprep.subr.bf16.mxu0 %v2460_v11  ;;  %1829 = vmatprep.subr.bf16.mxu1 %v2478_v33 }
 0x16c   :  { %1799 = vmatpush1.bf16.msra.mxu0 %v2469_v25  ;;  %1831 = vmatpush1.bf16.msra.mxu1 %v2485_v41 }
 0x16d   :  { %1801 = vmatprep.subr.bf16.mxu0 %v2472_v28  ;;  %1833 = vmatprep.subr.bf16.mxu1 %v2488_v42 }
 0x170   :  { %1803 = vmatpush1.bf16.msra.mxu0 %v2481_v40  ;;  %1835 = vmatpush1.bf16.msra.mxu1 %v2492_v48 }
 0x171   :  { %1837 = vmatprep.subr.bf16.mxu0 %v2400_v5  ;;  %1869 = vmatprep.subr.bf16.mxu1 %v2413_v23 }
 0x226   :  { %v364_v45 = vpop.f32.mrb[2].mxu0  ;;  %v435_v50 = vpop.f32.mrb[2].mxu1 }
 0x227   :  { %v366_v52 = vpop.f32.mrb[3].mxu0  ;;  %v437_v54 = vpop.f32.mrb[3].mxu1 }
 0x228   :  { %v444_v55 = vcombine.low %v364_v45, %v366_v52  ;;  %v445_v57 = vcombine.low %v435_v50, %v437_v54  ;;  %v481_v50 = vld [vmem:[#allocation3 + $0x20] sm:$0xff] }
 0x22a   :  { %v448_v58 = vadd.f32 %v444_v55, %v296_v51  ;;  %v449_v3 = vadd.f32 %v445_v57, %v297_v60 }
 0x22c   :  { %v1621_v61 = vmul.f32 -1.442695, %v448_v58  ;;  %v457_v62 = vrot.slane %v448_v58, 4  ;;  %v467_v4 = vrot.slane %v449_v3, 4  ;;  %v482_v58 = vld [vmem:[#allocation3 + $0x28] sm:$0xff] }
 0x22e   :  { %2179 = vpow2.f32 %v1621_v61  ;;  %v1622_v0 = vmul.f32 -1.442695, %v457_v62  ;;  %v1623_v6 = vmul.f32 -1.442695, %v467_v4 }
 0x230   :  { %2181 = vpow2.f32 %v1622_v0 }
 0x231   :  { %2183 = vtanh.f32 %v449_v3 }
 0x232   :  { %2185 = vpow2.f32 %v1623_v6 }
 0x238   :  { %v2180_v7 = vpop.eup %2179 }
 0x239   :  { %v453_v12 = vadd.f32 1.0, %v2180_v7 }
 0x23a   :  { %v2182_v13 = vpop.eup %2181 }
 0x23b   :  { %2187 = vrcp.f32 %v453_v12  ;;  %v462_v14 = vadd.f32 1.0, %v2182_v13  ;;  %v2184_v17 = vpop.eup %2183 }
 0x23c   :  { %v2186_v20 = vpop.eup %2185 }
 0x23d   :  { %2189 = vrcp.f32 %v462_v14  ;;  %v472_v29 = vadd.f32 1.0, %v2186_v20 }
 0x23f   :  { %2191 = vrcp.f32 %v472_v29 }
 0x245   :  { %v2188_v21 = vpop.eup %2187 }
 0x246   :  { %v476_v22 = vmul.f32 %v2188_v21, %v2184_v17 }
 0x247   :  { %v2190_v24 = vpop.eup %2189 }
 0x248   :  { %v475_v30 = vmul.f32 %v2190_v24, %v2534_v36 }
 0x249   :  { %v2192_v37 = vpop.eup %2191 }
 0x24a   :  { %v2572_v35 = vadd.f32 %v476_v22, %v475_v30 }
 0x24c   :  { %2193 = vtanh.f32 %v2572_v35 }
 0x256   :  { %v2194_v39 = vpop.eup %2193 }
 0x257   :  { %v479_v44 = vmul.f32 %v2194_v39, %v2192_v37 }
 0x259   :  { %548 = vmatmul.mubr.f32.vlgmr.msra.gmra.mrb[4].mxu0 %v479_v44  ;;  %619 = vmatmul.mubr.f32.vlgmr.msra.gmra.mrb[4].mxu1 %v479_v44 }
 0x25a   :  { %1839 = vmatpush1.bf16.msra.mxu0 %v2402_v9  ;;  %1871 = vmatpush1.bf16.msra.mxu1 %v2415_v26 }
 0x25b   :  { %1841 = vmatprep.subr.bf16.mxu0 %v2404_v10  ;;  %1873 = vmatprep.subr.bf16.mxu1 %v2425_v34 }
 0x25c   :  { %732 = vmatprep.mubr.f32.mxu0 %v2345_v1  ;;  %803 = vmatprep.mubr.f32.mxu1 %v2345_v1 }
 0x25e   :  { %1843 = vmatpush1.bf16.msra.mxu0 %v2408_v15  ;;  %1875 = vmatpush1.bf16.msra.mxu1 %v2427_v38 }
 0x25f   :  { %1845 = vmatprep.subr.bf16.mxu0 %v2411_v18  ;;  %1877 = vmatprep.subr.bf16.mxu1 %v2433_v46 }
 0x262   :  { %1847 = vmatpush1.bf16.msra.mxu0 %v2418_v27  ;;  %1879 = vmatpush1.bf16.msra.mxu1 %v2439_v49 }
 0x263   :  { %1849 = vmatprep.subr.bf16.mxu0 %v2422_v31  ;;  %1881 = vmatprep.subr.bf16.mxu1 %v2442_v53 }
 0x266   :  { %1851 = vmatpush1.bf16.msra.mxu0 %v2431_v43  ;;  %1883 = vmatpush1.bf16.msra.mxu1 %v2451_v63 }
 0x267   :  { %1853 = vmatprep.subr.bf16.mxu0 %v2436_v47  ;;  %1885 = vmatprep.subr.bf16.mxu1 %v2454_v2 }
 0x26a   :  { %1855 = vmatpush1.bf16.msra.mxu0 %v2445_v56  ;;  %1887 = vmatpush1.bf16.msra.mxu1 %v2463_v16 }
 0x26b   :  { %1857 = vmatprep.subr.bf16.mxu0 %v2448_v59  ;;  %1889 = vmatprep.subr.bf16.mxu1 %v2466_v19 }
 0x26e   :  { %1859 = vmatpush1.bf16.msra.mxu0 %v2457_v8  ;;  %1891 = vmatpush1.bf16.msra.mxu1 %v2475_v32 }
 0x26f   :  { %1861 = vmatprep.subr.bf16.mxu0 %v2460_v11  ;;  %1893 = vmatprep.subr.bf16.mxu1 %v2478_v33 }
 0x272   :  { %1863 = vmatpush1.bf16.msra.mxu0 %v2469_v25  ;;  %1895 = vmatpush1.bf16.msra.mxu1 %v2485_v41 }
 0x273   :  { %1865 = vmatprep.subr.bf16.mxu0 %v2472_v28  ;;  %1897 = vmatprep.subr.bf16.mxu1 %v2488_v42 }
 0x276   :  { %1867 = vmatpush1.bf16.msra.mxu0 %v2481_v40  ;;  %1899 = vmatpush1.bf16.msra.mxu1 %v2492_v48 }
 0x277   :  { %1901 = vmatprep.subr.bf16.mxu0 %v2400_v5  ;;  %1933 = vmatprep.subr.bf16.mxu1 %v2413_v23 }
 0x32c   :  { %v549_v36 = vpop.f32.mrb[4].mxu0  ;;  %v620_v45 = vpop.f32.mrb[4].mxu1 }
 0x32d   :  { %v551_v51 = vpop.f32.mrb[5].mxu0  ;;  %v622_v52 = vpop.f32.mrb[5].mxu1 }
 0x32e   :  { %v629_v54 = vcombine.low %v549_v36, %v551_v51  ;;  %v630_v55 = vcombine.low %v620_v45, %v622_v52  ;;  %v666_v45 = vld [vmem:[#allocation3 + $0x30] sm:$0xff] }
 0x330   :  { %v633_v57 = vadd.f32 %v629_v54, %v481_v50  ;;  %v634_v0 = vadd.f32 %v630_v55, %v482_v58 }
 0x332   :  { %v1624_v60 = vmul.f32 -1.442695, %v633_v57  ;;  %v642_v61 = vrot.slane %v633_v57, 4  ;;  %v652_v3 = vrot.slane %v634_v0, 4  ;;  %v667_v57 = vld [vmem:[#allocation3 + $0x38] sm:$0xff] }
 0x334   :  { %2195 = vpow2.f32 %v1624_v60  ;;  %v1625_v62 = vmul.f32 -1.442695, %v642_v61  ;;  %v1626_v4 = vmul.f32 -1.442695, %v652_v3 }
 0x336   :  { %2197 = vpow2.f32 %v1625_v62 }
 0x337   :  { %2199 = vtanh.f32 %v634_v0 }
 0x338   :  { %2201 = vpow2.f32 %v1626_v4 }
 0x33e   :  { %v2196_v6 = vpop.eup %2195 }
 0x33f   :  { %v638_v7 = vadd.f32 1.0, %v2196_v6 }
 0x340   :  { %v2198_v12 = vpop.eup %2197 }
 0x341   :  { %2203 = vrcp.f32 %v638_v7  ;;  %v647_v13 = vadd.f32 1.0, %v2198_v12  ;;  %v2200_v14 = vpop.eup %2199 }
 0x342   :  { %v2202_v17 = vpop.eup %2201 }
 0x343   :  { %2205 = vrcp.f32 %v647_v13  ;;  %v657_v24 = vadd.f32 1.0, %v2202_v17 }
 0x345   :  { %2207 = vrcp.f32 %v657_v24 }
 0x34b   :  { %v2204_v20 = vpop.eup %2203 }
 0x34c   :  { %v661_v21 = vmul.f32 %v2204_v20, %v2200_v14 }
 0x34d   :  { %v2206_v22 = vpop.eup %2205 }
 0x34e   :  { %v660_v29 = vmul.f32 %v2206_v22, %v2572_v35 }
 0x34f   :  { %v2208_v37 = vpop.eup %2207 }
 0x350   :  { %v2610_v30 = vadd.f32 %v661_v21, %v660_v29 }
 0x352   :  { %2209 = vtanh.f32 %v2610_v30 }
 0x35c   :  { %v2210_v39 = vpop.eup %2209 }
 0x35d   :  { %v664_v44 = vmul.f32 %v2210_v39, %v2208_v37 }
 0x35f   :  { %733 = vmatmul.mubr.f32.vlgmr.msra.gmra.mrb[6].mxu0 %v664_v44  ;;  %804 = vmatmul.mubr.f32.vlgmr.msra.gmra.mrb[6].mxu1 %v664_v44 }
 0x360   :  { %1903 = vmatpush1.bf16.msra.mxu0 %v2402_v9  ;;  %1935 = vmatpush1.bf16.msra.mxu1 %v2415_v26 }
 0x361   :  { %1905 = vmatprep.subr.bf16.mxu0 %v2404_v10  ;;  %1937 = vmatprep.subr.bf16.mxu1 %v2425_v34 }
 0x362   :  { %917 = vmatprep.mubr.f32.mxu0 %v2345_v1  ;;  %988 = vmatprep.mubr.f32.mxu1 %v2345_v1 }
 0x364   :  { %1907 = vmatpush1.bf16.msra.mxu0 %v2408_v15  ;;  %1939 = vmatpush1.bf16.msra.mxu1 %v2427_v38 }
 0x365   :  { %1909 = vmatprep.subr.bf16.mxu0 %v2411_v18  ;;  %1941 = vmatprep.subr.bf16.mxu1 %v2433_v46 }
 0x368   :  { %1911 = vmatpush1.bf16.msra.mxu0 %v2418_v27  ;;  %1943 = vmatpush1.bf16.msra.mxu1 %v2439_v49 }
 0x369   :  { %1913 = vmatprep.subr.bf16.mxu0 %v2422_v31  ;;  %1945 = vmatprep.subr.bf16.mxu1 %v2442_v53 }
 0x36c   :  { %1915 = vmatpush1.bf16.msra.mxu0 %v2431_v43  ;;  %1947 = vmatpush1.bf16.msra.mxu1 %v2451_v63 }
 0x36d   :  { %1917 = vmatprep.subr.bf16.mxu0 %v2436_v47  ;;  %1949 = vmatprep.subr.bf16.mxu1 %v2454_v2 }
 0x370   :  { %1919 = vmatpush1.bf16.msra.mxu0 %v2445_v56  ;;  %1951 = vmatpush1.bf16.msra.mxu1 %v2463_v16 }
 0x371   :  { %1921 = vmatprep.subr.bf16.mxu0 %v2448_v59  ;;  %1953 = vmatprep.subr.bf16.mxu1 %v2466_v19 }
 0x374   :  { %1923 = vmatpush1.bf16.msra.mxu0 %v2457_v8  ;;  %1955 = vmatpush1.bf16.msra.mxu1 %v2475_v32 }
 0x375   :  { %1925 = vmatprep.subr.bf16.mxu0 %v2460_v11  ;;  %1957 = vmatprep.subr.bf16.mxu1 %v2478_v33 }
 0x378   :  { %1927 = vmatpush1.bf16.msra.mxu0 %v2469_v25  ;;  %1959 = vmatpush1.bf16.msra.mxu1 %v2485_v41 }
 0x379   :  { %1929 = vmatprep.subr.bf16.mxu0 %v2472_v28  ;;  %1961 = vmatprep.subr.bf16.mxu1 %v2488_v42 }
 0x37c   :  { %1931 = vmatpush1.bf16.msra.mxu0 %v2481_v40  ;;  %1963 = vmatpush1.bf16.msra.mxu1 %v2492_v48 }
 0x37d   :  { %1965 = vmatprep.subr.bf16.mxu0 %v2400_v5  ;;  %1997 = vmatprep.subr.bf16.mxu1 %v2413_v23 }
 0x432   :  { %v734_v35 = vpop.f32.mrb[6].mxu0  ;;  %v805_v36 = vpop.f32.mrb[6].mxu1 }
 0x433   :  { %v736_v50 = vpop.f32.mrb[7].mxu0  ;;  %v807_v51 = vpop.f32.mrb[7].mxu1 }
 0x434   :  { %v814_v52 = vcombine.low %v734_v35, %v736_v50  ;;  %v815_v54 = vcombine.low %v805_v36, %v807_v51  ;;  %v851_v36 = vld [vmem:[#allocation3 + $0x40] sm:$0xff] }
 0x436   :  { %v818_v55 = vadd.f32 %v814_v52, %v666_v45  ;;  %v819_v62 = vadd.f32 %v815_v54, %v667_v57 }
 0x438   :  { %v1627_v58 = vmul.f32 -1.442695, %v818_v55  ;;  %v827_v60 = vrot.slane %v818_v55, 4  ;;  %v837_v0 = vrot.slane %v819_v62, 4  ;;  %v852_v55 = vld [vmem:[#allocation3 + $0x48] sm:$0xff] }
 0x43a   :  { %2211 = vpow2.f32 %v1627_v58  ;;  %v1628_v61 = vmul.f32 -1.442695, %v827_v60  ;;  %v1629_v3 = vmul.f32 -1.442695, %v837_v0 }
 0x43c   :  { %2213 = vpow2.f32 %v1628_v61 }
 0x43d   :  { %2215 = vtanh.f32 %v819_v62 }
 0x43e   :  { %2217 = vpow2.f32 %v1629_v3 }
 0x444   :  { %v2212_v4 = vpop.eup %2211 }
 0x445   :  { %v823_v6 = vadd.f32 1.0, %v2212_v4 }
 0x446   :  { %v2214_v7 = vpop.eup %2213 }
 0x447   :  { %2219 = vrcp.f32 %v823_v6  ;;  %v832_v12 = vadd.f32 1.0, %v2214_v7  ;;  %v2216_v13 = vpop.eup %2215 }
 0x448   :  { %v2218_v14 = vpop.eup %2217 }
 0x449   :  { %2221 = vrcp.f32 %v832_v12  ;;  %v842_v22 = vadd.f32 1.0, %v2218_v14 }
 0x44b   :  { %2223 = vrcp.f32 %v842_v22 }
 0x451   :  { %v2220_v17 = vpop.eup %2219 }
 0x452   :  { %v846_v20 = vmul.f32 %v2220_v17, %v2216_v13 }
 0x453   :  { %v2222_v21 = vpop.eup %2221 }
 0x454   :  { %v845_v24 = vmul.f32 %v2222_v21, %v2610_v30 }
 0x455   :  { %v2224_v37 = vpop.eup %2223 }
 0x456   :  { %v2648_v29 = vadd.f32 %v846_v20, %v845_v24 }
 0x458   :  { %2225 = vtanh.f32 %v2648_v29 }
 0x462   :  { %v2226_v39 = vpop.eup %2225 }
 0x463   :  { %v849_v44 = vmul.f32 %v2226_v39, %v2224_v37 }
 0x465   :  { %918 = vmatmul.mubr.f32.vlgmr.msra.gmra.mrb[8].mxu0 %v849_v44  ;;  %989 = vmatmul.mubr.f32.vlgmr.msra.gmra.mrb[8].mxu1 %v849_v44 }
 0x466   :  { %1967 = vmatpush1.bf16.msra.mxu0 %v2402_v9  ;;  %1999 = vmatpush1.bf16.msra.mxu1 %v2415_v26 }
 0x467   :  { %1969 = vmatprep.subr.bf16.mxu0 %v2404_v10  ;;  %2001 = vmatprep.subr.bf16.mxu1 %v2425_v34 }
 0x468   :  { %1102 = vmatprep.mubr.f32.mxu0 %v2345_v1  ;;  %1173 = vmatprep.mubr.f32.mxu1 %v2345_v1 }
 0x46a   :  { %1971 = vmatpush1.bf16.msra.mxu0 %v2408_v15  ;;  %2003 = vmatpush1.bf16.msra.mxu1 %v2427_v38 }
 0x46b   :  { %1973 = vmatprep.subr.bf16.mxu0 %v2411_v18  ;;  %2005 = vmatprep.subr.bf16.mxu1 %v2433_v46 }
 0x46e   :  { %1975 = vmatpush1.bf16.msra.mxu0 %v2418_v27  ;;  %2007 = vmatpush1.bf16.msra.mxu1 %v2439_v49 }
 0x46f   :  { %1977 = vmatprep.subr.bf16.mxu0 %v2422_v31  ;;  %2009 = vmatprep.subr.bf16.mxu1 %v2442_v53 }
 0x472   :  { %1979 = vmatpush1.bf16.msra.mxu0 %v2431_v43  ;;  %2011 = vmatpush1.bf16.msra.mxu1 %v2451_v63 }
 0x473   :  { %1981 = vmatprep.subr.bf16.mxu0 %v2436_v47  ;;  %2013 = vmatprep.subr.bf16.mxu1 %v2454_v2 }
 0x476   :  { %1983 = vmatpush1.bf16.msra.mxu0 %v2445_v56  ;;  %2015 = vmatpush1.bf16.msra.mxu1 %v2463_v16 }
 0x477   :  { %1985 = vmatprep.subr.bf16.mxu0 %v2448_v59  ;;  %2017 = vmatprep.subr.bf16.mxu1 %v2466_v19 }
 0x47a   :  { %1987 = vmatpush1.bf16.msra.mxu0 %v2457_v8  ;;  %2019 = vmatpush1.bf16.msra.mxu1 %v2475_v32 }
 0x47b   :  { %1989 = vmatprep.subr.bf16.mxu0 %v2460_v11  ;;  %2021 = vmatprep.subr.bf16.mxu1 %v2478_v33 }
 0x47e   :  { %1991 = vmatpush1.bf16.msra.mxu0 %v2469_v25  ;;  %2023 = vmatpush1.bf16.msra.mxu1 %v2485_v41 }
 0x47f   :  { %1993 = vmatprep.subr.bf16.mxu0 %v2472_v28  ;;  %2025 = vmatprep.subr.bf16.mxu1 %v2488_v42 }
 0x482   :  { %1995 = vmatpush1.bf16.msra.mxu0 %v2481_v40  ;;  %2027 = vmatpush1.bf16.msra.mxu1 %v2492_v48 }
 0x483   :  { %2029 = vmatprep.subr.bf16.mxu0 %v2400_v5  ;;  %2061 = vmatprep.subr.bf16.mxu1 %v2413_v23 }
 0x538   :  { %v919_v30 = vpop.f32.mrb[8].mxu0  ;;  %v990_v35 = vpop.f32.mrb[8].mxu1 }
 0x539   :  { %v921_v45 = vpop.f32.mrb[9].mxu0  ;;  %v992_v50 = vpop.f32.mrb[9].mxu1 }
 0x53a   :  { %v999_v51 = vcombine.low %v919_v30, %v921_v45  ;;  %v1000_v52 = vcombine.low %v990_v35, %v992_v50  ;;  %v1036_v35 = vld [vmem:[#allocation3 + $0x50] sm:$0xff] }
 0x53c   :  { %v1003_v54 = vadd.f32 %v999_v51, %v851_v36  ;;  %v1004_v61 = vadd.f32 %v1000_v52, %v852_v55 }
 0x53e   :  { %v1630_v57 = vmul.f32 -1.442695, %v1003_v54  ;;  %v1012_v58 = vrot.slane %v1003_v54, 4  ;;  %v1022_v62 = vrot.slane %v1004_v61, 4  ;;  %v1037_v54 = vld [vmem:[#allocation3 + $0x58] sm:$0xff] }
 0x540   :  { %2227 = vpow2.f32 %v1630_v57  ;;  %v1631_v60 = vmul.f32 -1.442695, %v1012_v58  ;;  %v1632_v0 = vmul.f32 -1.442695, %v1022_v62 }
 0x542   :  { %2229 = vpow2.f32 %v1631_v60 }
 0x543   :  { %2231 = vtanh.f32 %v1004_v61 }
 0x544   :  { %2233 = vpow2.f32 %v1632_v0 }
 0x54a   :  { %v2228_v3 = vpop.eup %2227 }
 0x54b   :  { %v1008_v4 = vadd.f32 1.0, %v2228_v3 }
 0x54c   :  { %v2230_v6 = vpop.eup %2229 }
 0x54d   :  { %2235 = vrcp.f32 %v1008_v4  ;;  %v1017_v7 = vadd.f32 1.0, %v2230_v6  ;;  %v2232_v12 = vpop.eup %2231 }
 0x54e   :  { %v2234_v13 = vpop.eup %2233 }
 0x54f   :  { %2237 = vrcp.f32 %v1017_v7  ;;  %v1027_v21 = vadd.f32 1.0, %v2234_v13 }
 0x551   :  { %2239 = vrcp.f32 %v1027_v21 }
 0x557   :  { %v2236_v14 = vpop.eup %2235 }
 0x558   :  { %v1031_v17 = vmul.f32 %v2236_v14, %v2232_v12 }
 0x559   :  { %v2238_v20 = vpop.eup %2237 }
 0x55a   :  { %v1030_v22 = vmul.f32 %v2238_v20, %v2648_v29 }
 0x55b   :  { %v2240_v37 = vpop.eup %2239 }
 0x55c   :  { %v2686_v24 = vadd.f32 %v1031_v17, %v1030_v22 }
 0x55e   :  { %2241 = vtanh.f32 %v2686_v24 }
 0x568   :  { %v2242_v39 = vpop.eup %2241 }
 0x569   :  { %v1034_v44 = vmul.f32 %v2242_v39, %v2240_v37  ;;  %v1406_v39 = vld [vmem:[#allocation3 + $0x70] sm:$0xff] }
 0x56b   :  { %1103 = vmatmul.mubr.f32.vlgmr.msra.gmra.mrb[10].mxu0 %v1034_v44  ;;  %1174 = vmatmul.mubr.f32.vlgmr.msra.gmra.mrb[10].mxu1 %v1034_v44 }
 0x56c   :  { %2031 = vmatpush1.bf16.msra.mxu0 %v2402_v9  ;;  %2063 = vmatpush1.bf16.msra.mxu1 %v2415_v26 }
 0x56d   :  { %2033 = vmatprep.subr.bf16.mxu0 %v2404_v10  ;;  %2065 = vmatprep.subr.bf16.mxu1 %v2425_v34 }
 0x56e   :  { %1287 = vmatprep.mubr.f32.mxu0 %v2345_v1  ;;  %1358 = vmatprep.mubr.f32.mxu1 %v2345_v1 }
 0x570   :  { %2035 = vmatpush1.bf16.msra.mxu0 %v2408_v15  ;;  %2067 = vmatpush1.bf16.msra.mxu1 %v2427_v38 }
 0x571   :  { %2037 = vmatprep.subr.bf16.mxu0 %v2411_v18  ;;  %2069 = vmatprep.subr.bf16.mxu1 %v2433_v46 }
 0x574   :  { %2039 = vmatpush1.bf16.msra.mxu0 %v2418_v27  ;;  %2071 = vmatpush1.bf16.msra.mxu1 %v2439_v49 }
 0x575   :  { %2041 = vmatprep.subr.bf16.mxu0 %v2422_v31  ;;  %2073 = vmatprep.subr.bf16.mxu1 %v2442_v53 }
 0x578   :  { %2043 = vmatpush1.bf16.msra.mxu0 %v2431_v43  ;;  %2075 = vmatpush1.bf16.msra.mxu1 %v2451_v63 }
 0x579   :  { %2045 = vmatprep.subr.bf16.mxu0 %v2436_v47  ;;  %2077 = vmatprep.subr.bf16.mxu1 %v2454_v2 }
 0x57c   :  { %2047 = vmatpush1.bf16.msra.mxu0 %v2445_v56  ;;  %2079 = vmatpush1.bf16.msra.mxu1 %v2463_v16 }
 0x57d   :  { %2049 = vmatprep.subr.bf16.mxu0 %v2448_v59  ;;  %2081 = vmatprep.subr.bf16.mxu1 %v2466_v19 }
 0x580   :  { %2051 = vmatpush1.bf16.msra.mxu0 %v2457_v8  ;;  %2083 = vmatpush1.bf16.msra.mxu1 %v2475_v32 }
 0x581   :  { %2053 = vmatprep.subr.bf16.mxu0 %v2460_v11  ;;  %2085 = vmatprep.subr.bf16.mxu1 %v2478_v33 }
 0x584   :  { %2055 = vmatpush1.bf16.msra.mxu0 %v2469_v25  ;;  %2087 = vmatpush1.bf16.msra.mxu1 %v2485_v41 }
 0x585   :  { %2057 = vmatprep.subr.bf16.mxu0 %v2472_v28  ;;  %2089 = vmatprep.subr.bf16.mxu1 %v2488_v42 }
 0x588   :  { %2059 = vmatpush1.bf16.msra.mxu0 %v2481_v40  ;;  %2091 = vmatpush1.bf16.msra.mxu1 %v2492_v48 }
 0x589   :  { %2093 = vmatprep.subr.bf16.mxu0 %v2400_v5  ;;  %2125 = vmatprep.subr.bf16.mxu1 %v2413_v23 }
 0x63e   :  { %v1104_v29 = vpop.f32.mrb[10].mxu0  ;;  %v1175_v30 = vpop.f32.mrb[10].mxu1 }
 0x63f   :  { %v1106_v36 = vpop.f32.mrb[11].mxu0  ;;  %v1177_v45 = vpop.f32.mrb[11].mxu1 }
 0x640   :  { %v1184_v50 = vcombine.low %v1104_v29, %v1106_v36  ;;  %v1185_v51 = vcombine.low %v1175_v30, %v1177_v45  ;;  %v1407_v45 = vld [vmem:[#allocation3 + $0x78] sm:$0xff] }
 0x642   :  { %v1188_v52 = vadd.f32 %v1184_v50, %v1036_v35  ;;  %v1189_v60 = vadd.f32 %v1185_v51, %v1037_v54 }
 0x644   :  { %v1633_v55 = vmul.f32 -1.442695, %v1188_v52  ;;  %v1197_v57 = vrot.slane %v1188_v52, 4  ;;  %v1207_v61 = vrot.slane %v1189_v60, 4 }
 0x646   :  { %2243 = vpow2.f32 %v1633_v55  ;;  %v1634_v58 = vmul.f32 -1.442695, %v1197_v57  ;;  %v1635_v62 = vmul.f32 -1.442695, %v1207_v61 }
 0x648   :  { %2245 = vpow2.f32 %v1634_v58 }
 0x649   :  { %2247 = vtanh.f32 %v1189_v60 }
 0x64a   :  { %2249 = vpow2.f32 %v1635_v62 }
 0x650   :  { %v2244_v5 = vpop.eup %2243 }
 0x651   :  { %v1193_v0 = vadd.f32 1.0, %v2244_v5 }
 0x652   :  { %v2246_v23 = vpop.eup %2245 }
 0x653   :  { %2251 = vrcp.f32 %v1193_v0  ;;  %v1202_v3 = vadd.f32 1.0, %v2246_v23  ;;  %v2248_v4 = vpop.eup %2247 }
 0x654   :  { %v2250_v6 = vpop.eup %2249 }
 0x655   :  { %2253 = vrcp.f32 %v1202_v3  ;;  %v1212_v14 = vadd.f32 1.0, %v2250_v6 }
 0x657   :  { %2255 = vrcp.f32 %v1212_v14 }
 0x65d   :  { %v2252_v7 = vpop.eup %2251 }
 0x65e   :  { %v1216_v12 = vmul.f32 %v2252_v7, %v2248_v4 }
 0x65f   :  { %v2254_v13 = vpop.eup %2253 }
 0x660   :  { %v1215_v17 = vmul.f32 %v2254_v13, %v2686_v24 }
 0x661   :  { %v2256_v21 = vpop.eup %2255 }
 0x662   :  { %v2724_v20 = vadd.f32 %v1216_v12, %v1215_v17  ;;  %v1642_v17 = vld [vmem:[%s2768_s2] ss:$0 sm:$0xff] }
 0x664   :  { %2257 = vtanh.f32 %v2724_v20 }
 0x66e   :  { %v2258_v22 = vpop.eup %2257 }
 0x66f   :  { %v1219_v37 = vmul.f32 %v2258_v22, %v2256_v21 }
 0x671   :  { %1288 = vmatmul.mubr.f32.vlgmr.msra.gmra.mrb[12].mxu0 %v1219_v37  ;;  %1359 = vmatmul.mubr.f32.vlgmr.msra.gmra.mrb[12].mxu1 %v1219_v37  ;;  %v1643_v37 = vld [vmem:[#allocation2] ss:$0 sm:$0xff] }
 0x672   :  { %2095 = vmatpush1.bf16.msra.mxu0 %v2402_v9  ;;  %2127 = vmatpush1.bf16.msra.mxu1 %v2415_v26 }
 0x673   :  { %2097 = vmatprep.subr.bf16.mxu0 %v2404_v10  ;;  %2129 = vmatprep.subr.bf16.mxu1 %v2425_v34  ;;  %v1221_v10 = vld [vmem:[#allocation3 + $0x60] sm:$0xff]  ;;  %v1222_v34 = vld [vmem:[#allocation3 + $0x68] sm:$0xff] }
 0x674   :  { %1472 = vmatprep.mubr.f32.mxu0 %v2345_v1  ;;  %1543 = vmatprep.mubr.f32.mxu1 %v2345_v1 }
 0x676   :  { %2099 = vmatpush1.bf16.msra.mxu0 %v2408_v15  ;;  %2131 = vmatpush1.bf16.msra.mxu1 %v2427_v38 }
 0x677   :  { %2101 = vmatprep.subr.bf16.mxu0 %v2411_v18  ;;  %2133 = vmatprep.subr.bf16.mxu1 %v2433_v46 }
 0x67a   :  { %2103 = vmatpush1.bf16.msra.mxu0 %v2418_v27  ;;  %2135 = vmatpush1.bf16.msra.mxu1 %v2439_v49 }
 0x67b   :  { %2105 = vmatprep.subr.bf16.mxu0 %v2422_v31  ;;  %2137 = vmatprep.subr.bf16.mxu1 %v2442_v53 }
 0x67e   :  { %2107 = vmatpush1.bf16.msra.mxu0 %v2431_v43  ;;  %2139 = vmatpush1.bf16.msra.mxu1 %v2451_v63 }
 0x67f   :  { %2109 = vmatprep.subr.bf16.mxu0 %v2436_v47  ;;  %2141 = vmatprep.subr.bf16.mxu1 %v2454_v2 }
 0x682   :  { %2111 = vmatpush1.bf16.msra.mxu0 %v2445_v56  ;;  %2143 = vmatpush1.bf16.msra.mxu1 %v2463_v16 }
 0x683   :  { %2113 = vmatprep.subr.bf16.mxu0 %v2448_v59  ;;  %2145 = vmatprep.subr.bf16.mxu1 %v2466_v19 }
 0x686   :  { %2115 = vmatpush1.bf16.msra.mxu0 %v2457_v8  ;;  %2147 = vmatpush1.bf16.msra.mxu1 %v2475_v32 }
 0x687   :  { %2117 = vmatprep.subr.bf16.mxu0 %v2460_v11  ;;  %2149 = vmatprep.subr.bf16.mxu1 %v2478_v33 }
 0x68a   :  { %2119 = vmatpush1.bf16.msra.mxu0 %v2469_v25  ;;  %2151 = vmatpush1.bf16.msra.mxu1 %v2485_v41 }
 0x68b   :  { %2121 = vmatprep.subr.bf16.mxu0 %v2472_v28  ;;  %2153 = vmatprep.subr.bf16.mxu1 %v2488_v42 }
 0x68e   :  { %2123 = vmatpush1.bf16.msra.mxu0 %v2481_v40  ;;  %2155 = vmatpush1.bf16.msra.mxu1 %v2492_v48 }
 0x744   :  { %v1289_v1 = vpop.f32.mrb[12].mxu0  ;;  %v1360_v9 = vpop.f32.mrb[12].mxu1 }
 0x745   :  { %v1291_v15 = vpop.f32.mrb[13].mxu0  ;;  %v1362_v18 = vpop.f32.mrb[13].mxu1 }
 0x746   :  { %v1369_v26 = vcombine.low %v1289_v1, %v1291_v15  ;;  %v1370_v27 = vcombine.low %v1360_v9, %v1362_v18 }
 0x748   :  { %v1373_v31 = vadd.f32 %v1369_v26, %v1221_v10  ;;  %v1374_v47 = vadd.f32 %v1370_v27, %v1222_v34 }
 0x74a   :  { %v1636_v38 = vmul.f32 -1.442695, %v1373_v31  ;;  %v1382_v43 = vrot.slane %v1373_v31, 4  ;;  %v1392_v49 = vrot.slane %v1374_v47, 4 }
 0x74c   :  { %2259 = vpow2.f32 %v1636_v38  ;;  %v1637_v46 = vmul.f32 -1.442695, %v1382_v43  ;;  %v1638_v53 = vmul.f32 -1.442695, %v1392_v49 }
 0x74e   :  { %2261 = vpow2.f32 %v1637_v46 }
 0x74f   :  { %2263 = vtanh.f32 %v1374_v47 }
 0x750   :  { %2265 = vpow2.f32 %v1638_v53 }
 0x756   :  { %v2260_v56 = vpop.eup %2259 }
 0x757   :  { %v1378_v59 = vadd.f32 1.0, %v2260_v56 }
 0x758   :  { %v2262_v63 = vpop.eup %2261 }
 0x759   :  { %2267 = vrcp.f32 %v1378_v59  ;;  %v1387_v2 = vadd.f32 1.0, %v2262_v63  ;;  %v2264_v8 = vpop.eup %2263 }
 0x75a   :  { %v2266_v11 = vpop.eup %2265 }
 0x75b   :  { %2269 = vrcp.f32 %v1387_v2  ;;  %v1397_v28 = vadd.f32 1.0, %v2266_v11 }
 0x75d   :  { %2271 = vrcp.f32 %v1397_v28 }
 0x763   :  { %v2268_v16 = vpop.eup %2267 }
 0x764   :  { %v1401_v19 = vmul.f32 %v2268_v16, %v2264_v8 }
 0x765   :  { %v2270_v25 = vpop.eup %2269 }
 0x766   :  { %v1400_v32 = vmul.f32 %v2270_v25, %v2724_v20 }
 0x767   :  { %v2272_v40 = vpop.eup %2271 }
 0x768   :  { %v1402_v33 = vadd.f32 %v1401_v19, %v1400_v32 }
 0x76a   :  { %2273 = vtanh.f32 %v1402_v33 }
 0x774   :  { %v2274_v41 = vpop.eup %2273 }
 0x775   :  { %v1404_v42 = vmul.f32 %v2274_v41, %v2272_v40 }
 0x777   :  { %1473 = vmatmul.mubr.f32.vlgmr.msra.gmra.mrb[14].mxu0 %v1404_v42  ;;  %1544 = vmatmul.mubr.f32.vlgmr.msra.gmra.mrb[14].mxu1 %v1404_v42 }
 0x84a   :  { %v1474_v48 = vpop.f32.mrb[14].mxu0  ;;  %v1545_v24 = vpop.f32.mrb[14].mxu1 }
 0x84b   :  { %v1476_v44 = vpop.f32.mrb[15].mxu0  ;;  %v1547_v29 = vpop.f32.mrb[15].mxu1 }
 0x84c   :  { %v1554_v30 = vcombine.low %v1474_v48, %v1476_v44  ;;  %v1555_v35 = vcombine.low %v1545_v24, %v1547_v29 }
 0x84e   :  { %v1558_v36 = vadd.f32 %v1554_v30, %v1406_v39  ;;  %v1559_v54 = vadd.f32 %v1555_v35, %v1407_v45 }
 0x850   :  { %v1639_v50 = vmul.f32 -1.442695, %v1558_v36  ;;  %v1567_v51 = vrot.slane %v1558_v36, 4  ;;  %v1577_v55 = vrot.slane %v1559_v54, 4 }
 0x852   :  { %2275 = vpow2.f32 %v1639_v50  ;;  %v1640_v52 = vmul.f32 -1.442695, %v1567_v51  ;;  %v1641_v57 = vmul.f32 -1.442695, %v1577_v55 }
 0x854   :  { %2277 = vpow2.f32 %v1640_v52 }
 0x855   :  { %2279 = vtanh.f32 %v1559_v54 }
 0x856   :  { %2281 = vpow2.f32 %v1641_v57 }
 0x85c   :  { %v2276_v58 = vpop.eup %2275 }
 0x85d   :  { %v1563_v60 = vadd.f32 1.0, %v2276_v58 }
 0x85e   :  { %v2278_v61 = vpop.eup %2277 }
 0x85f   :  { %2283 = vrcp.f32 %v1563_v60  ;;  %v1572_v62 = vadd.f32 1.0, %v2278_v61  ;;  %v2280_v5 = vpop.eup %2279 }
 0x860   :  { %v2282_v0 = vpop.eup %2281 }
 0x861   :  { %2285 = vrcp.f32 %v1572_v62  ;;  %v1582_v6 = vadd.f32 1.0, %v2282_v0 }
 0x863   :  { %2287 = vrcp.f32 %v1582_v6 }
 0x869   :  { %v2284_v23 = vpop.eup %2283 }
 0x86a   :  { %v1586_v3 = vmul.f32 %v2284_v23, %v2280_v5 }
 0x86b   :  { %v2286_v4 = vpop.eup %2285 }
 0x86c   :  { %v1585_v7 = vmul.f32 %v2286_v4, %v1402_v33 }
 0x86d   :  { %v2288_v13 = vpop.eup %2287 }
 0x86e   :  { %v1587_v12 = vadd.f32 %v1586_v3, %v1585_v7 }
 0x870   :  { %2289 = vtanh.f32 %v1587_v12 }
 0x87a   :  { %v2290_v14 = vpop.eup %2289 }
 0x87b   :  { %v1589_v20 = vmul.f32 %v2290_v14, %v2288_v13 }
 0x87d   :  { %v1597_v21 = vmul.f32 %v1642_v17, %v1589_v20 }
 0x87f   :  { %v1599_v22 = vsel %vm1598_vm0, %v1597_v21, 0.0 }
 0x880   :  { %1600 = vadd.xlane.f32.xlu0 %v1599_v22 }
 0x90d   :  { %v1601_v1 = vpop.xlane.xlu0 %1600 }
 0x90e   :  { %v1609_v9 = vadd.f32 %v1643_v37, %v1601_v1 }
 0x910   :  { %1611 = vst.msk [vmem:[%s2770_s4] sm:$0xf] %vm1610_vm1, %v1609_v9 }
 0x911   :  { %1616 = vsyncpa [#allocation4], 1 }
 0x912   :  { %1617 = vsyncpa [#allocation6], 1 }

</bundles_post_ra>
